<compile_context>
chip_gen: v7x
topology: tpu7x:2x2x1
jax: 0.10.0
libtpu: 0.0.40
codegen_flags: <defaults>
</compile_context>

<pallas_src>
import functools

import jax
import jax.numpy as jnp
import numpy as np
from jax.experimental import pallas as pl
from jax.experimental.pallas import tpu as pltpu


# ---------------------------------------------------------------------------
# small helpers
# ---------------------------------------------------------------------------

def _round_up(v, m):
    return (v + m - 1) // m * m


def _vmem_cap():
    """Scoped-VMEM ceiling: physical capacity minus headroom (v7x 64 MiB/TC ->
    ~48 MiB; v5e/v6e 128 MiB -> ~112 MiB).  Conservative fallback: 48 MiB."""
    cap = 48 << 20
    try:
        phys = int(pltpu.get_tpu_info().vmem_capacity_bytes)
        cap = min(max(phys - (16 << 20), 32 << 20), 112 << 20)
    except Exception:
        pass
    return cap


def _vmem_limit(block_bytes, scratch_bytes, cap):
    """Double-buffered blocks + scratch + headroom, capped per device."""
    est = int(1.5 * (2 * block_bytes + scratch_bytes)) + (2 << 20)
    return int(min(max(est, 4 << 20), cap))


def _pick_bt(N, HW, cin_p, cout_p, cap):
    """Images per grid step: largest divisor of N whose tiles fit the budget."""
    budget = max(cap // 2, 8 << 20)
    cmax = max(cin_p, cout_p)
    best = 1
    for bt in range(1, N + 1):
        if N % bt:
            continue
        scratch = 9 * cmax * HW * bt * 2                      # bf16 im2col
        blocks = bt * HW * (cin_p * 4 + 4 * cout_p * 2)       # x f32 + bf16 acts
        if 2 * blocks + scratch <= budget and bt * HW <= 16384:
            best = bt
    return best


def _tap_masks(H, W):
    """(9, 1, H*W) 0/1 masks: mask[t]==1 where 3x3 tap t stays inside the
    image (emulates pad=1 zero padding without any padded buffer)."""
    hh, ww = np.meshgrid(np.arange(H), np.arange(W), indexing="ij")
    masks = np.zeros((9, 1, H * W), np.float32)
    t = 0
    for dy in (-1, 0, 1):
        for dx in (-1, 0, 1):
            valid = ((hh + dy >= 0) & (hh + dy < H) &
                     (ww + dx >= 0) & (ww + dx < W))
            masks[t, 0, :] = valid.reshape(-1).astype(np.float32)
            t += 1
    return jnp.asarray(masks)


def _fill_im2col(src, m_ref, col_ref, img, W, C):
    """src: (C, H*W) f32.  Writes the 9-tap im2col columns of image `img`
    into col_ref[:, img*HW:(img+1)*HW] as bf16 via lane rotations + boundary
    masks (single-matmul 3x3 conv, pad=1 emulated with 0/1 masks)."""
    HW = src.shape[-1]
    cols = slice(img * HW, (img + 1) * HW)
    t = 0
    for dy in (-1, 0, 1):
        for dx in (-1, 0, 1):
            off = dy * W + dx                       # flattened source offset
            rows = slice(t * C, (t + 1) * C)
            if off == 0:
                col_ref[rows, cols] = src.astype(col_ref.dtype)
            else:
                # pltpu.roll follows the jnp.roll convention:
                # rolled[p] = src[(p - shift) % HW]; we need rolled[p] = src[p + off].
                rolled = pltpu.roll(src, (-off) % HW, 1)
                col_ref[rows, cols] = (rolled * m_ref[t]).astype(col_ref.dtype)
            t += 1


# ---------------------------------------------------------------------------
# kernels (grid over batch groups; Bt images per step)
# ---------------------------------------------------------------------------

def _pass1_kernel(x_ref, m_ref, w1_ref, b1_ref, *rest,
                  W, Cin_p, Bt, has_proj):
    """conv1 (+ optional 1x1 projection) and per-tile BN partial statistics."""
    if has_proj:
        (ws_ref, bs_ref, y1_ref, s1_ref, q1_ref,
         s_ref, ss_ref, qs_ref, col_ref) = rest
    else:
        y1_ref, s1_ref, q1_ref, col_ref = rest

    HW = m_ref.shape[-1]
    for b in range(Bt):
        _fill_im2col(x_ref[b], m_ref, col_ref, b, W, Cin_p)

    y1 = jnp.dot(w1_ref[...], col_ref[...],
                 preferred_element_type=jnp.float32) + b1_ref[...]
    for b in range(Bt):
        y1_ref[b] = y1[:, b * HW:(b + 1) * HW].astype(y1_ref.dtype)
    s1_ref[0] = jnp.sum(y1, axis=1, keepdims=True)           # partial BN1 stats
    q1_ref[0] = jnp.sum(y1 * y1, axis=1, keepdims=True)

    if has_proj:
        # 1x1 projection reuses the centre-tap rows of the shared im2col tile.
        centre = col_ref[4 * Cin_p:5 * Cin_p, :]
        s = jnp.dot(ws_ref[...], centre,
                    preferred_element_type=jnp.float32) + bs_ref[...]
        for b in range(Bt):
            s_ref[b] = s[:, b * HW:(b + 1) * HW].astype(s_ref.dtype)
        ss_ref[0] = jnp.sum(s, axis=1, keepdims=True)
        qs_ref[0] = jnp.sum(s * s, axis=1, keepdims=True)


def _pass2_kernel(y1_ref, m_ref, sc1_ref, sh1_ref, w2_ref, b2_ref,
                  y2_ref, s2_ref, q2_ref, col_ref, *, W, Cout_p, Bt):
    """BN1 (folded scale/shift) + ReLU + conv2 + partial BN2 statistics."""
    HW = m_ref.shape[-1]
    sc1, sh1 = sc1_ref[...], sh1_ref[...]
    for b in range(Bt):
        h = jnp.maximum(y1_ref[b].astype(jnp.float32) * sc1 + sh1, 0.0)
        _fill_im2col(h, m_ref, col_ref, b, W, Cout_p)

    y2 = jnp.dot(w2_ref[...], col_ref[...],
                 preferred_element_type=jnp.float32) + b2_ref[...]
    for b in range(Bt):
        y2_ref[b] = y2[:, b * HW:(b + 1) * HW].astype(y2_ref.dtype)
    s2_ref[0] = jnp.sum(y2, axis=1, keepdims=True)
    q2_ref[0] = jnp.sum(y2 * y2, axis=1, keepdims=True)


def _pass3_kernel(y2_ref, s_ref, sc2_ref, sh2_ref, scs_ref, shs_ref, out_ref,
                  *, Bt):
    """BN2 + shortcut (BN'd projection or identity) + final ReLU."""
    sc2, sh2 = sc2_ref[...], sh2_ref[...]
    scs, shs = scs_ref[...], shs_ref[...]
    for b in range(Bt):
        o = y2_ref[b].astype(jnp.float32) * sc2 + sh2
        o = o + s_ref[b].astype(jnp.float32) * scs + shs
        out_ref[b] = jnp.maximum(o, 0.0)


# ---------------------------------------------------------------------------
# wrapper
# ---------------------------------------------------------------------------

def _pad_vec(v, n):
    v = v.astype(jnp.float32)
    return v if v.shape[0] == n else jnp.pad(v, (0, n - v.shape[0]))


def _col(v, n):
    return _pad_vec(v, n).reshape(-1, 1)


def _conv_w(w, cin_p, cout_p):
    """HWIO (3,3,Ci,Co) -> (Co_p, 9*Ci_p) bf16 with zero-padded channels."""
    ci, co = w.shape[2], w.shape[3]
    w = jnp.transpose(w, (3, 0, 1, 2))                        # (Co, 3, 3, Ci)
    w = jnp.pad(w, ((0, cout_p - co), (0, 0), (0, 0), (0, cin_p - ci)))
    return w.reshape(cout_p, 9 * cin_p).astype(jnp.bfloat16)


def _bn_scale_shift(psum, psumsq, gamma, beta, count, eps):
    """Fold training-mode batch stats into per-channel scale/shift, (C,1)."""
    mean = jnp.sum(psum, axis=0)[:, 0] / count
    var = jnp.maximum(jnp.sum(psumsq, axis=0)[:, 0] / count - mean * mean, 0.0)
    scale = gamma * jax.lax.rsqrt(var + eps)
    shift = beta - mean * scale
    return scale.reshape(-1, 1), shift.reshape(-1, 1)


def resblock_pallas(x_nchw, params, eps=1e-5):
    """ResBlock forward. x_nchw: (N, Cin, H, W) f32 -> (N, Cout, H, W) f32."""
    N, Cin, H, W = x_nchw.shape
    Cout = params["w1"].shape[-1]
    has_proj = "ws" in params
    assert has_proj or Cin == Cout
    HW = H * W
    f32, bf16 = jnp.float32, jnp.bfloat16

    Cin_p, Cout_p = _round_up(Cin, 8), _round_up(Cout, 8)
    cap = _vmem_cap()
    Bt = _pick_bt(N, HW, Cin_p, Cout_p, cap)
    G = N // Bt

    # NCHW -> (N, C, H*W): contiguous reshape; pad channels to a sublane multiple.
    x = x_nchw.reshape(N, Cin, HW).astype(f32)
    if Cin_p != Cin:
        x = jnp.pad(x, ((0, 0), (0, Cin_p - Cin), (0, 0)))
    masks = _tap_masks(H, W)                                   # (9, 1, HW) f32
    count = float(N * HW)

    w1, b1 = _conv_w(params["w1"], Cin_p, Cout_p), _col(params["b1"], Cout_p)
    w2, b2 = _conv_w(params["w2"], Cout_p, Cout_p), _col(params["b2"], Cout_p)
    g1, be1 = _pad_vec(params["g1"], Cout_p), _pad_vec(params["be1"], Cout_p)
    g2, be2 = _pad_vec(params["g2"], Cout_p), _pad_vec(params["be2"], Cout_p)

    x_spec = pl.BlockSpec((Bt, Cin_p, HW), lambda n: (n, 0, 0))
    y_spec = pl.BlockSpec((Bt, Cout_p, HW), lambda n: (n, 0, 0))
    st_spec = pl.BlockSpec((1, Cout_p, 1), lambda n: (n, 0, 0))
    mask_spec = pl.BlockSpec((9, 1, HW), lambda n: (0, 0, 0))

    def full2d(shape):
        return pl.BlockSpec(shape, lambda n: (0, 0))

    # ---- pass 1: conv1 (+ optional projection) + partial BN stats -----------
    in_specs = [x_spec, mask_spec, full2d((Cout_p, 9 * Cin_p)), full2d((Cout_p, 1))]
    in_args = [x, masks, w1, b1]
    out_shape = [jax.ShapeDtypeStruct((N, Cout_p, HW), bf16),
                 jax.ShapeDtypeStruct((G, Cout_p, 1), f32),
                 jax.ShapeDtypeStruct((G, Cout_p, 1), f32)]
    out_specs = [y_spec, st_spec, st_spec]
    if has_proj:
        ws = jnp.transpose(params["ws"])                        # (Cout, Cin)
        ws = jnp.pad(ws, ((0, Cout_p - Cout), (0, Cin_p - Cin))).astype(bf16)
        in_specs += [full2d((Cout_p, Cin_p)), full2d((Cout_p, 1))]
        in_args += [ws, _col(params["bs"], Cout_p)]
        out_shape += [jax.ShapeDtypeStruct((N, Cout_p, HW), bf16),
                      jax.ShapeDtypeStruct((G, Cout_p, 1), f32),
                      jax.ShapeDtypeStruct((G, Cout_p, 1), f32)]
        out_specs += [y_spec, st_spec, st_spec]

    blk1 = (Bt * Cin_p * HW * 4 + 9 * HW * 4 + Cout_p * 9 * Cin_p * 2
            + Cout_p * 4 + Bt * Cout_p * HW * 2 + 2 * Cout_p * 4)
    if has_proj:
        blk1 += Cout_p * Cin_p * 2 + Cout_p * 4 + Bt * Cout_p * HW * 2 + 2 * Cout_p * 4
    scratch1 = 9 * Cin_p * Bt * HW * 2

    res1 = pl.pallas_call(
        functools.partial(_pass1_kernel, W=W, Cin_p=Cin_p, Bt=Bt,
                          has_proj=has_proj),
        grid=(G,),
        in_specs=in_specs,
        out_specs=tuple(out_specs),
        out_shape=tuple(out_shape),
        scratch_shapes=[pltpu.VMEM((9 * Cin_p, Bt * HW), bf16)],
        compiler_params=pltpu.CompilerParams(
            dimension_semantics=("parallel",),
            vmem_limit_bytes=_vmem_limit(blk1, scratch1, cap)),
    )(*in_args)

    if has_proj:
        y1, p1, q1, s_pre, ps, qs = res1
        gs, bes = _pad_vec(params["gs"], Cout_p), _pad_vec(params["bes"], Cout_p)
        scs, shs = _bn_scale_shift(ps, qs, gs, bes, count, eps)
    else:
        y1, p1, q1 = res1
        s_pre = x                                   # identity shortcut (f32)
        scs = jnp.ones((Cout_p, 1), f32)
        shs = jnp.zeros((Cout_p, 1), f32)
    sc1, sh1 = _bn_scale_shift(p1, q1, g1, be1, count, eps)

    # ---- pass 2: BN1 + ReLU + conv2 + partial BN2 stats ----------------------
    blk2 = (2 * Bt * Cout_p * HW * 2 + 9 * HW * 4 + 2 * Cout_p * 4
            + Cout_p * 9 * Cout_p * 2 + Cout_p * 4 + 2 * Cout_p * 4)
    scratch2 = 9 * Cout_p * Bt * HW * 2
    y2, p2, q2 = pl.pallas_call(
        functools.partial(_pass2_kernel, W=W, Cout_p=Cout_p, Bt=Bt),
        grid=(G,),
        in_specs=[y_spec, mask_spec, full2d((Cout_p, 1)), full2d((Cout_p, 1)),
                  full2d((Cout_p, 9 * Cout_p)), full2d((Cout_p, 1))],
        out_specs=(y_spec, st_spec, st_spec),
        out_shape=(jax.ShapeDtypeStruct((N, Cout_p, HW), bf16),
                   jax.ShapeDtypeStruct((G, Cout_p, 1), f32),
                   jax.ShapeDtypeStruct((G, Cout_p, 1), f32)),
        scratch_shapes=[pltpu.VMEM((9 * Cout_p, Bt * HW), bf16)],
        compiler_params=pltpu.CompilerParams(
            dimension_semantics=("parallel",),
            vmem_limit_bytes=_vmem_limit(blk2, scratch2, cap)),
    )(y1, masks, sc1, sh1, w2, b2)
    sc2, sh2 = _bn_scale_shift(p2, q2, g2, be2, count, eps)

    # ---- pass 3: BN2 + shortcut + ReLU ---------------------------------------
    s_bytes = 2 if has_proj else 4
    blk3 = Bt * Cout_p * HW * (2 + s_bytes + 4) + 4 * Cout_p * 4
    out_flat = pl.pallas_call(
        functools.partial(_pass3_kernel, Bt=Bt),
        grid=(G,),
        in_specs=[y_spec, y_spec, full2d((Cout_p, 1)), full2d((Cout_p, 1)),
                  full2d((Cout_p, 1)), full2d((Cout_p, 1))],
        out_specs=y_spec,
        out_shape=jax.ShapeDtypeStruct((N, Cout_p, HW), f32),
        compiler_params=pltpu.CompilerParams(
            dimension_semantics=("parallel",),
            vmem_limit_bytes=_vmem_limit(blk3, 0, cap)),
    )(y2, s_pre, sc2, sh2, scs, shs)

    out = out_flat[:, :Cout, :] if Cout_p != Cout else out_flat
    return out.reshape(N, Cout, H, W)


# ---------------- pure-JAX reference (bf16 matmul inputs, f32 accum) ---------
def resblock_ref(x, params, eps=1e-5):
    f32, bf16 = jnp.float32, jnp.bfloat16

    def conv(x, w, b, pad):
        y = jax.lax.conv_general_dilated(
            x.astype(bf16), w.astype(bf16), window_strides=(1, 1),
            padding=[(pad, pad), (pad, pad)],
            dimension_numbers=("NCHW", "HWIO", "NCHW"),
            preferred_element_type=f32)
        return y + b.reshape(1, -1, 1, 1).astype(f32)

    def bn(y, g, b):
        m = jnp.mean(y, axis=(0, 2, 3), keepdims=True)
        v = jnp.mean((y - m) ** 2, axis=(0, 2, 3), keepdims=True)
        return ((y - m) * jax.lax.rsqrt(v + eps) * g.reshape(1, -1, 1, 1)
                + b.reshape(1, -1, 1, 1))

    x = x.astype(f32)
    out = conv(x, params["w1"], params["b1"], 1)
    out = jnp.maximum(bn(out, params["g1"], params["be1"]), 0.0)
    out = conv(out, params["w2"], params["b2"], 1)
    out = bn(out, params["g2"], params["be2"])
    if "ws" in params:
        s = conv(x, params["ws"].reshape(1, 1, *params["ws"].shape),
                 params["bs"], 0)
        s = bn(s, params["gs"], params["bes"])
    else:
        s = x
    return jnp.maximum(out + s, 0.0)


def init_params(key, in_channels, out_channels):
    ks = jax.random.split(key, 16)
    p = {
        "w1": 0.2 * jax.random.normal(ks[0], (3, 3, in_channels, out_channels), jnp.float32),
        "b1": 0.1 * jax.random.normal(ks[1], (out_channels,), jnp.float32),
        "g1": 1.0 + 0.1 * jax.random.normal(ks[2], (out_channels,), jnp.float32),
        "be1": 0.1 * jax.random.normal(ks[3], (out_channels,), jnp.float32),
        "w2": 0.2 * jax.random.normal(ks[4], (3, 3, out_channels, out_channels), jnp.float32),
        "b2": 0.1 * jax.random.normal(ks[5], (out_channels,), jnp.float32),
        "g2": 1.0 + 0.1 * jax.random.normal(ks[6], (out_channels,), jnp.float32),
        "be2": 0.1 * jax.random.normal(ks[7], (out_channels,), jnp.float32),
    }
    if in_channels != out_channels:
        p.update({
            "ws": 0.3 * jax.random.normal(ks[8], (in_channels, out_channels), jnp.float32),
            "bs": 0.1 * jax.random.normal(ks[9], (out_channels,), jnp.float32),
            "gs": 1.0 + 0.1 * jax.random.normal(ks[10], (out_channels,), jnp.float32),
            "bes": 0.1 * jax.random.normal(ks[11], (out_channels,), jnp.float32),
        })
    return p


if __name__ == "__main__":
    key = jax.random.PRNGKey(0)
    k_param, k_x, k_param2, k_x2 = jax.random.split(key, 4)

    fwd = jax.jit(resblock_pallas)

    # projection-shortcut case (Cin != Cout) -- mirrors the module spec
    N, Cin, Cout, H, W = 2, 4, 8, 16, 16
    params = init_params(k_param, Cin, Cout)
    x = jax.random.normal(k_x, (N, Cin, H, W), jnp.float32)
    out = jax.block_until_ready(fwd(x, params))
    ref = jax.block_until_ready(resblock_ref(x, params))
    assert out.shape == (N, Cout, H, W)
    err = float(jnp.max(jnp.abs(out - ref)))
    assert err < 6e-2, f"projection case: max abs error {err}"

    # identity-shortcut case (Cin == Cout), non-square spatial extent
    params2 = init_params(k_param2, 8, 8)
    x2 = jax.random.normal(k_x2, (2, 8, 8, 16), jnp.float32)
    out2 = jax.block_until_ready(fwd(x2, params2))
    ref2 = jax.block_until_ready(resblock_ref(x2, params2))
    err2 = float(jnp.max(jnp.abs(out2 - ref2)))
    assert err2 < 6e-2, f"identity case: max abs error {err2}"

    print("KERNEL_OK")
</pallas_src>

<mosaic_0001>
module attributes {stable_mosaic.version = 11 : i64} {
  func.func @_pass1_kernel(%arg0: i32, %arg1: memref<2x8x256xf32, #tpu.memory_space<vmem>>, %arg2: memref<9x1x256xf32, #tpu.memory_space<vmem>>, %arg3: memref<8x72xbf16, #tpu.memory_space<vmem>>, %arg4: memref<8x1xf32, #tpu.memory_space<vmem>>, %arg5: memref<8x8xbf16, #tpu.memory_space<vmem>>, %arg6: memref<8x1xf32, #tpu.memory_space<vmem>>, %arg7: memref<2x8x256xbf16, #tpu.memory_space<vmem>>, %arg8: memref<1x8x1xf32, #tpu.memory_space<vmem>>, %arg9: memref<1x8x1xf32, #tpu.memory_space<vmem>>, %arg10: memref<2x8x256xbf16, #tpu.memory_space<vmem>>, %arg11: memref<1x8x1xf32, #tpu.memory_space<vmem>>, %arg12: memref<1x8x1xf32, #tpu.memory_space<vmem>>, %arg13: memref<72x512xbf16, #tpu.memory_space<vmem>>) attributes {dimension_semantics = [#tpu.dimension_semantics<parallel>], iteration_bounds = array<i64: 1>, scalar_prefetch = 0 : i64, scratch_operands = 1 : i64, tpu.core_type = #tpu.core_type<tc>, window_params = [{transform_indices = @transform_0, window_bounds = array<i64: 2, 8, 256>}, {pipeline_mode = #tpu.pipeline_mode<synchronous>, transform_indices = @transform_1, window_bounds = array<i64: 9, 1, 256>}, {pipeline_mode = #tpu.pipeline_mode<synchronous>, transform_indices = @transform_2, window_bounds = array<i64: 8, 72>}, {pipeline_mode = #tpu.pipeline_mode<synchronous>, transform_indices = @transform_3, window_bounds = array<i64: 8, 1>}, {pipeline_mode = #tpu.pipeline_mode<synchronous>, transform_indices = @transform_4, window_bounds = array<i64: 8, 8>}, {pipeline_mode = #tpu.pipeline_mode<synchronous>, transform_indices = @transform_5, window_bounds = array<i64: 8, 1>}, {transform_indices = @transform_6, window_bounds = array<i64: 2, 8, 256>}, {transform_indices = @transform_7, window_bounds = array<i64: 1, 8, 1>}, {transform_indices = @transform_8, window_bounds = array<i64: 1, 8, 1>}, {transform_indices = @transform_9, window_bounds = array<i64: 2, 8, 256>}, {transform_indices = @transform_10, window_bounds = array<i64: 1, 8, 1>}, {transform_indices = @transform_11, window_bounds = array<i64: 1, 8, 1>}]} {
    %c0 = arith.constant 0 : index
    %c0_0 = arith.constant 0 : index
    %c0_1 = arith.constant 0 : index
    %0 = vector.load %arg1[%c0, %c0_0, %c0_1] : memref<2x8x256xf32, #tpu.memory_space<vmem>>, vector<1x8x256xf32>
    %1 = vector.shape_cast %0 : vector<1x8x256xf32> to vector<8x256xf32>
    %c17_i32 = arith.constant 17 : i32
    %2 = tpu.dynamic_rotate %1 by %c17_i32 dim 1 : vector<8x256xf32>, i32 -> vector<8x256xf32>
    %c0_2 = arith.constant 0 : index
    %c0_3 = arith.constant 0 : index
    %c0_4 = arith.constant 0 : index
    %3 = vector.load %arg2[%c0_2, %c0_3, %c0_4] : memref<9x1x256xf32, #tpu.memory_space<vmem>>, vector<1x1x256xf32>
    %4 = vector.shape_cast %3 : vector<1x1x256xf32> to vector<1x256xf32>
    %5 = vector.broadcast %4 : vector<1x256xf32> to vector<8x256xf32>
    %6 = arith.mulf %2, %5 : vector<8x256xf32>
    %7 = arith.truncf %6 : vector<8x256xf32> to vector<8x256xbf16>
    %c0_5 = arith.constant 0 : index
    %c0_6 = arith.constant 0 : index
    %8 = vector.load %arg13[%c0_5, %c0_6] : memref<72x512xbf16, #tpu.memory_space<vmem>>, vector<8x256xbf16>
    tpu.vector_store %arg13[%c0_5, %c0_6], %7 {strides = array<i32>} : memref<72x512xbf16, #tpu.memory_space<vmem>>, vector<8x256xbf16>,
    %c16_i32 = arith.constant 16 : i32
    %9 = tpu.dynamic_rotate %1 by %c16_i32 dim 1 : vector<8x256xf32>, i32 -> vector<8x256xf32>
    %c1 = arith.constant 1 : index
    %c0_7 = arith.constant 0 : index
    %c0_8 = arith.constant 0 : index
    %10 = vector.load %arg2[%c1, %c0_7, %c0_8] : memref<9x1x256xf32, #tpu.memory_space<vmem>>, vector<1x1x256xf32>
    %11 = vector.shape_cast %10 : vector<1x1x256xf32> to vector<1x256xf32>
    %12 = vector.broadcast %11 : vector<1x256xf32> to vector<8x256xf32>
    %13 = arith.mulf %9, %12 : vector<8x256xf32>
    %14 = arith.truncf %13 : vector<8x256xf32> to vector<8x256xbf16>
    %c8 = arith.constant 8 : index
    %c0_9 = arith.constant 0 : index
    %15 = vector.load %arg13[%c8, %c0_9] : memref<72x512xbf16, #tpu.memory_space<vmem>>, vector<8x256xbf16>
    tpu.vector_store %arg13[%c8, %c0_9], %14 {strides = array<i32>} : memref<72x512xbf16, #tpu.memory_space<vmem>>, vector<8x256xbf16>,
    %c15_i32 = arith.constant 15 : i32
    %16 = tpu.dynamic_rotate %1 by %c15_i32 dim 1 : vector<8x256xf32>, i32 -> vector<8x256xf32>
    %c2 = arith.constant 2 : index
    %c0_10 = arith.constant 0 : index
    %c0_11 = arith.constant 0 : index
    %17 = vector.load %arg2[%c2, %c0_10, %c0_11] : memref<9x1x256xf32, #tpu.memory_space<vmem>>, vector<1x1x256xf32>
    %18 = vector.shape_cast %17 : vector<1x1x256xf32> to vector<1x256xf32>
    %19 = vector.broadcast %18 : vector<1x256xf32> to vector<8x256xf32>
    %20 = arith.mulf %16, %19 : vector<8x256xf32>
    %21 = arith.truncf %20 : vector<8x256xf32> to vector<8x256xbf16>
    %c16 = arith.constant 16 : index
    %c0_12 = arith.constant 0 : index
    %22 = vector.load %arg13[%c16, %c0_12] : memref<72x512xbf16, #tpu.memory_space<vmem>>, vector<8x256xbf16>
    tpu.vector_store %arg13[%c16, %c0_12], %21 {strides = array<i32>} : memref<72x512xbf16, #tpu.memory_space<vmem>>, vector<8x256xbf16>,
    %c1_i32 = arith.constant 1 : i32
    %23 = tpu.dynamic_rotate %1 by %c1_i32 dim 1 : vector<8x256xf32>, i32 -> vector<8x256xf32>
    %c3 = arith.constant 3 : index
    %c0_13 = arith.constant 0 : index
    %c0_14 = arith.constant 0 : index
    %24 = vector.load %arg2[%c3, %c0_13, %c0_14] : memref<9x1x256xf32, #tpu.memory_space<vmem>>, vector<1x1x256xf32>
    %25 = vector.shape_cast %24 : vector<1x1x256xf32> to vector<1x256xf32>
    %26 = vector.broadcast %25 : vector<1x256xf32> to vector<8x256xf32>
    %27 = arith.mulf %23, %26 : vector<8x256xf32>
    %28 = arith.truncf %27 : vector<8x256xf32> to vector<8x256xbf16>
    %c24 = arith.constant 24 : index
    %c0_15 = arith.constant 0 : index
    %29 = vector.load %arg13[%c24, %c0_15] : memref<72x512xbf16, #tpu.memory_space<vmem>>, vector<8x256xbf16>
    tpu.vector_store %arg13[%c24, %c0_15], %28 {strides = array<i32>} : memref<72x512xbf16, #tpu.memory_space<vmem>>, vector<8x256xbf16>,
    %30 = arith.truncf %1 : vector<8x256xf32> to vector<8x256xbf16>
    %c32 = arith.constant 32 : index
    %c0_16 = arith.constant 0 : index
    %31 = vector.load %arg13[%c32, %c0_16] : memref<72x512xbf16, #tpu.memory_space<vmem>>, vector<8x256xbf16>
    tpu.vector_store %arg13[%c32, %c0_16], %30 {strides = array<i32>} : memref<72x512xbf16, #tpu.memory_space<vmem>>, vector<8x256xbf16>,
    %c255_i32 = arith.constant 255 : i32
    %32 = tpu.dynamic_rotate %1 by %c255_i32 dim 1 : vector<8x256xf32>, i32 -> vector<8x256xf32>
    %c5 = arith.constant 5 : index
    %c0_17 = arith.constant 0 : index
    %c0_18 = arith.constant 0 : index
    %33 = vector.load %arg2[%c5, %c0_17, %c0_18] : memref<9x1x256xf32, #tpu.memory_space<vmem>>, vector<1x1x256xf32>
    %34 = vector.shape_cast %33 : vector<1x1x256xf32> to vector<1x256xf32>
    %35 = vector.broadcast %34 : vector<1x256xf32> to vector<8x256xf32>
    %36 = arith.mulf %32, %35 : vector<8x256xf32>
    %37 = arith.truncf %36 : vector<8x256xf32> to vector<8x256xbf16>
    %c40 = arith.constant 40 : index
    %c0_19 = arith.constant 0 : index
    %38 = vector.load %arg13[%c40, %c0_19] : memref<72x512xbf16, #tpu.memory_space<vmem>>, vector<8x256xbf16>
    tpu.vector_store %arg13[%c40, %c0_19], %37 {strides = array<i32>} : memref<72x512xbf16, #tpu.memory_space<vmem>>, vector<8x256xbf16>,
    %c241_i32 = arith.constant 241 : i32
    %39 = tpu.dynamic_rotate %1 by %c241_i32 dim 1 : vector<8x256xf32>, i32 -> vector<8x256xf32>
    %c6 = arith.constant 6 : index
    %c0_20 = arith.constant 0 : index
    %c0_21 = arith.constant 0 : index
    %40 = vector.load %arg2[%c6, %c0_20, %c0_21] : memref<9x1x256xf32, #tpu.memory_space<vmem>>, vector<1x1x256xf32>
    %41 = vector.shape_cast %40 : vector<1x1x256xf32> to vector<1x256xf32>
    %42 = vector.broadcast %41 : vector<1x256xf32> to vector<8x256xf32>
    %43 = arith.mulf %39, %42 : vector<8x256xf32>
    %44 = arith.truncf %43 : vector<8x256xf32> to vector<8x256xbf16>
    %c48 = arith.constant 48 : index
    %c0_22 = arith.constant 0 : index
    %45 = vector.load %arg13[%c48, %c0_22] : memref<72x512xbf16, #tpu.memory_space<vmem>>, vector<8x256xbf16>
    tpu.vector_store %arg13[%c48, %c0_22], %44 {strides = array<i32>} : memref<72x512xbf16, #tpu.memory_space<vmem>>, vector<8x256xbf16>,
    %c240_i32 = arith.constant 240 : i32
    %46 = tpu.dynamic_rotate %1 by %c240_i32 dim 1 : vector<8x256xf32>, i32 -> vector<8x256xf32>
    %c7 = arith.constant 7 : index
    %c0_23 = arith.constant 0 : index
    %c0_24 = arith.constant 0 : index
    %47 = vector.load %arg2[%c7, %c0_23, %c0_24] : memref<9x1x256xf32, #tpu.memory_space<vmem>>, vector<1x1x256xf32>
    %48 = vector.shape_cast %47 : vector<1x1x256xf32> to vector<1x256xf32>
    %49 = vector.broadcast %48 : vector<1x256xf32> to vector<8x256xf32>
    %50 = arith.mulf %46, %49 : vector<8x256xf32>
    %51 = arith.truncf %50 : vector<8x256xf32> to vector<8x256xbf16>
    %c56 = arith.constant 56 : index
    %c0_25 = arith.constant 0 : index
    %52 = vector.load %arg13[%c56, %c0_25] : memref<72x512xbf16, #tpu.memory_space<vmem>>, vector<8x256xbf16>
    tpu.vector_store %arg13[%c56, %c0_25], %51 {strides = array<i32>} : memref<72x512xbf16, #tpu.memory_space<vmem>>, vector<8x256xbf16>,
    %c239_i32 = arith.constant 239 : i32
    %53 = tpu.dynamic_rotate %1 by %c239_i32 dim 1 : vector<8x256xf32>, i32 -> vector<8x256xf32>
    %c8_26 = arith.constant 8 : index
    %c0_27 = arith.constant 0 : index
    %c0_28 = arith.constant 0 : index
    %54 = vector.load %arg2[%c8_26, %c0_27, %c0_28] : memref<9x1x256xf32, #tpu.memory_space<vmem>>, vector<1x1x256xf32>
    %55 = vector.shape_cast %54 : vector<1x1x256xf32> to vector<1x256xf32>
    %56 = vector.broadcast %55 : vector<1x256xf32> to vector<8x256xf32>
    %57 = arith.mulf %53, %56 : vector<8x256xf32>
    %58 = arith.truncf %57 : vector<8x256xf32> to vector<8x256xbf16>
    %c64 = arith.constant 64 : index
    %c0_29 = arith.constant 0 : index
    %59 = vector.load %arg13[%c64, %c0_29] : memref<72x512xbf16, #tpu.memory_space<vmem>>, vector<8x256xbf16>
    tpu.vector_store %arg13[%c64, %c0_29], %58 {strides = array<i32>} : memref<72x512xbf16, #tpu.memory_space<vmem>>, vector<8x256xbf16>,
    %c1_30 = arith.constant 1 : index
    %c0_31 = arith.constant 0 : index
    %c0_32 = arith.constant 0 : index
    %60 = vector.load %arg1[%c1_30, %c0_31, %c0_32] : memref<2x8x256xf32, #tpu.memory_space<vmem>>, vector<1x8x256xf32>
    %61 = vector.shape_cast %60 : vector<1x8x256xf32> to vector<8x256xf32>
    %c17_i32_33 = arith.constant 17 : i32
    %62 = tpu.dynamic_rotate %61 by %c17_i32_33 dim 1 : vector<8x256xf32>, i32 -> vector<8x256xf32>
    %c0_34 = arith.constant 0 : index
    %c0_35 = arith.constant 0 : index
    %c0_36 = arith.constant 0 : index
    %63 = vector.load %arg2[%c0_34, %c0_35, %c0_36] : memref<9x1x256xf32, #tpu.memory_space<vmem>>, vector<1x1x256xf32>
    %64 = vector.shape_cast %63 : vector<1x1x256xf32> to vector<1x256xf32>
    %65 = vector.broadcast %64 : vector<1x256xf32> to vector<8x256xf32>
    %66 = arith.mulf %62, %65 : vector<8x256xf32>
    %67 = arith.truncf %66 : vector<8x256xf32> to vector<8x256xbf16>
    %c0_37 = arith.constant 0 : index
    %c256 = arith.constant 256 : index
    %68 = vector.load %arg13[%c0_37, %c256] : memref<72x512xbf16, #tpu.memory_space<vmem>>, vector<8x256xbf16>
    tpu.vector_store %arg13[%c0_37, %c256], %67 {strides = array<i32>} : memref<72x512xbf16, #tpu.memory_space<vmem>>, vector<8x256xbf16>,
    %c16_i32_38 = arith.constant 16 : i32
    %69 = tpu.dynamic_rotate %61 by %c16_i32_38 dim 1 : vector<8x256xf32>, i32 -> vector<8x256xf32>
    %c1_39 = arith.constant 1 : index
    %c0_40 = arith.constant 0 : index
    %c0_41 = arith.constant 0 : index
    %70 = vector.load %arg2[%c1_39, %c0_40, %c0_41] : memref<9x1x256xf32, #tpu.memory_space<vmem>>, vector<1x1x256xf32>
    %71 = vector.shape_cast %70 : vector<1x1x256xf32> to vector<1x256xf32>
    %72 = vector.broadcast %71 : vector<1x256xf32> to vector<8x256xf32>
    %73 = arith.mulf %69, %72 : vector<8x256xf32>
    %74 = arith.truncf %73 : vector<8x256xf32> to vector<8x256xbf16>
    %c8_42 = arith.constant 8 : index
    %c256_43 = arith.constant 256 : index
    %75 = vector.load %arg13[%c8_42, %c256_43] : memref<72x512xbf16, #tpu.memory_space<vmem>>, vector<8x256xbf16>
    tpu.vector_store %arg13[%c8_42, %c256_43], %74 {strides = array<i32>} : memref<72x512xbf16, #tpu.memory_space<vmem>>, vector<8x256xbf16>,
    %c15_i32_44 = arith.constant 15 : i32
    %76 = tpu.dynamic_rotate %61 by %c15_i32_44 dim 1 : vector<8x256xf32>, i32 -> vector<8x256xf32>
    %c2_45 = arith.constant 2 : index
    %c0_46 = arith.constant 0 : index
    %c0_47 = arith.constant 0 : index
    %77 = vector.load %arg2[%c2_45, %c0_46, %c0_47] : memref<9x1x256xf32, #tpu.memory_space<vmem>>, vector<1x1x256xf32>
    %78 = vector.shape_cast %77 : vector<1x1x256xf32> to vector<1x256xf32>
    %79 = vector.broadcast %78 : vector<1x256xf32> to vector<8x256xf32>
    %80 = arith.mulf %76, %79 : vector<8x256xf32>
    %81 = arith.truncf %80 : vector<8x256xf32> to vector<8x256xbf16>
    %c16_48 = arith.constant 16 : index
    %c256_49 = arith.constant 256 : index
    %82 = vector.load %arg13[%c16_48, %c256_49] : memref<72x512xbf16, #tpu.memory_space<vmem>>, vector<8x256xbf16>
    tpu.vector_store %arg13[%c16_48, %c256_49], %81 {strides = array<i32>} : memref<72x512xbf16, #tpu.memory_space<vmem>>, vector<8x256xbf16>,
    %c1_i32_50 = arith.constant 1 : i32
    %83 = tpu.dynamic_rotate %61 by %c1_i32_50 dim 1 : vector<8x256xf32>, i32 -> vector<8x256xf32>
    %c3_51 = arith.constant 3 : index
    %c0_52 = arith.constant 0 : index
    %c0_53 = arith.constant 0 : index
    %84 = vector.load %arg2[%c3_51, %c0_52, %c0_53] : memref<9x1x256xf32, #tpu.memory_space<vmem>>, vector<1x1x256xf32>
    %85 = vector.shape_cast %84 : vector<1x1x256xf32> to vector<1x256xf32>
    %86 = vector.broadcast %85 : vector<1x256xf32> to vector<8x256xf32>
    %87 = arith.mulf %83, %86 : vector<8x256xf32>
    %88 = arith.truncf %87 : vector<8x256xf32> to vector<8x256xbf16>
    %c24_54 = arith.constant 24 : index
    %c256_55 = arith.constant 256 : index
    %89 = vector.load %arg13[%c24_54, %c256_55] : memref<72x512xbf16, #tpu.memory_space<vmem>>, vector<8x256xbf16>
    tpu.vector_store %arg13[%c24_54, %c256_55], %88 {strides = array<i32>} : memref<72x512xbf16, #tpu.memory_space<vmem>>, vector<8x256xbf16>,
    %90 = arith.truncf %61 : vector<8x256xf32> to vector<8x256xbf16>
    %c32_56 = arith.constant 32 : index
    %c256_57 = arith.constant 256 : index
    %91 = vector.load %arg13[%c32_56, %c256_57] : memref<72x512xbf16, #tpu.memory_space<vmem>>, vector<8x256xbf16>
    tpu.vector_store %arg13[%c32_56, %c256_57], %90 {strides = array<i32>} : memref<72x512xbf16, #tpu.memory_space<vmem>>, vector<8x256xbf16>,
    %c255_i32_58 = arith.constant 255 : i32
    %92 = tpu.dynamic_rotate %61 by %c255_i32_58 dim 1 : vector<8x256xf32>, i32 -> vector<8x256xf32>
    %c5_59 = arith.constant 5 : index
    %c0_60 = arith.constant 0 : index
    %c0_61 = arith.constant 0 : index
    %93 = vector.load %arg2[%c5_59, %c0_60, %c0_61] : memref<9x1x256xf32, #tpu.memory_space<vmem>>, vector<1x1x256xf32>
    %94 = vector.shape_cast %93 : vector<1x1x256xf32> to vector<1x256xf32>
    %95 = vector.broadcast %94 : vector<1x256xf32> to vector<8x256xf32>
    %96 = arith.mulf %92, %95 : vector<8x256xf32>
    %97 = arith.truncf %96 : vector<8x256xf32> to vector<8x256xbf16>
    %c40_62 = arith.constant 40 : index
    %c256_63 = arith.constant 256 : index
    %98 = vector.load %arg13[%c40_62, %c256_63] : memref<72x512xbf16, #tpu.memory_space<vmem>>, vector<8x256xbf16>
    tpu.vector_store %arg13[%c40_62, %c256_63], %97 {strides = array<i32>} : memref<72x512xbf16, #tpu.memory_space<vmem>>, vector<8x256xbf16>,
    %c241_i32_64 = arith.constant 241 : i32
    %99 = tpu.dynamic_rotate %61 by %c241_i32_64 dim 1 : vector<8x256xf32>, i32 -> vector<8x256xf32>
    %c6_65 = arith.constant 6 : index
    %c0_66 = arith.constant 0 : index
    %c0_67 = arith.constant 0 : index
    %100 = vector.load %arg2[%c6_65, %c0_66, %c0_67] : memref<9x1x256xf32, #tpu.memory_space<vmem>>, vector<1x1x256xf32>
    %101 = vector.shape_cast %100 : vector<1x1x256xf32> to vector<1x256xf32>
    %102 = vector.broadcast %101 : vector<1x256xf32> to vector<8x256xf32>
    %103 = arith.mulf %99, %102 : vector<8x256xf32>
    %104 = arith.truncf %103 : vector<8x256xf32> to vector<8x256xbf16>
    %c48_68 = arith.constant 48 : index
    %c256_69 = arith.constant 256 : index
    %105 = vector.load %arg13[%c48_68, %c256_69] : memref<72x512xbf16, #tpu.memory_space<vmem>>, vector<8x256xbf16>
    tpu.vector_store %arg13[%c48_68, %c256_69], %104 {strides = array<i32>} : memref<72x512xbf16, #tpu.memory_space<vmem>>, vector<8x256xbf16>,
    %c240_i32_70 = arith.constant 240 : i32
    %106 = tpu.dynamic_rotate %61 by %c240_i32_70 dim 1 : vector<8x256xf32>, i32 -> vector<8x256xf32>
    %c7_71 = arith.constant 7 : index
    %c0_72 = arith.constant 0 : index
    %c0_73 = arith.constant 0 : index
    %107 = vector.load %arg2[%c7_71, %c0_72, %c0_73] : memref<9x1x256xf32, #tpu.memory_space<vmem>>, vector<1x1x256xf32>
    %108 = vector.shape_cast %107 : vector<1x1x256xf32> to vector<1x256xf32>
    %109 = vector.broadcast %108 : vector<1x256xf32> to vector<8x256xf32>
    %110 = arith.mulf %106, %109 : vector<8x256xf32>
    %111 = arith.truncf %110 : vector<8x256xf32> to vector<8x256xbf16>
    %c56_74 = arith.constant 56 : index
    %c256_75 = arith.constant 256 : index
    %112 = vector.load %arg13[%c56_74, %c256_75] : memref<72x512xbf16, #tpu.memory_space<vmem>>, vector<8x256xbf16>
    tpu.vector_store %arg13[%c56_74, %c256_75], %111 {strides = array<i32>} : memref<72x512xbf16, #tpu.memory_space<vmem>>, vector<8x256xbf16>,
    %c239_i32_76 = arith.constant 239 : i32
    %113 = tpu.dynamic_rotate %61 by %c239_i32_76 dim 1 : vector<8x256xf32>, i32 -> vector<8x256xf32>
    %c8_77 = arith.constant 8 : index
    %c0_78 = arith.constant 0 : index
    %c0_79 = arith.constant 0 : index
    %114 = vector.load %arg2[%c8_77, %c0_78, %c0_79] : memref<9x1x256xf32, #tpu.memory_space<vmem>>, vector<1x1x256xf32>
    %115 = vector.shape_cast %114 : vector<1x1x256xf32> to vector<1x256xf32>
    %116 = vector.broadcast %115 : vector<1x256xf32> to vector<8x256xf32>
    %117 = arith.mulf %113, %116 : vector<8x256xf32>
    %118 = arith.truncf %117 : vector<8x256xf32> to vector<8x256xbf16>
    %c64_80 = arith.constant 64 : index
    %c256_81 = arith.constant 256 : index
    %119 = vector.load %arg13[%c64_80, %c256_81] : memref<72x512xbf16, #tpu.memory_space<vmem>>, vector<8x256xbf16>
    tpu.vector_store %arg13[%c64_80, %c256_81], %118 {strides = array<i32>} : memref<72x512xbf16, #tpu.memory_space<vmem>>, vector<8x256xbf16>,
    %c0_82 = arith.constant 0 : index
    %c0_83 = arith.constant 0 : index
    %120 = vector.load %arg3[%c0_82, %c0_83] : memref<8x72xbf16, #tpu.memory_space<vmem>>, vector<8x72xbf16>
    %c0_84 = arith.constant 0 : index
    %c0_85 = arith.constant 0 : index
    %121 = vector.load %arg13[%c0_84, %c0_85] : memref<72x512xbf16, #tpu.memory_space<vmem>>, vector<72x512xbf16>
    %cst = arith.constant dense<0.000000e+00> : vector<8x512xf32>
    %122 = tpu.matmul %120, %121, %cst {dimension_numbers = #tpu.dot_dimension_numbers<[1], [0], [0], [1], [0, 0, 1, 1], [], []>} : vector<8x72xbf16>, vector<72x512xbf16>, vector<8x512xf32> -> vector<8x512xf32>
    %c0_86 = arith.constant 0 : index
    %c0_87 = arith.constant 0 : index
    %123 = vector.load %arg4[%c0_86, %c0_87] : memref<8x1xf32, #tpu.memory_space<vmem>>, vector<8x1xf32>
    %124 = vector.broadcast %123 : vector<8x1xf32> to vector<8x512xf32>
    %125 = arith.addf %122, %124 : vector<8x512xf32>
    %126 = vector.extract_strided_slice %125 {offsets = [0, 0], sizes = [8, 256], strides = [1, 1]} : vector<8x512xf32> to vector<8x256xf32>
    %127 = arith.truncf %126 : vector<8x256xf32> to vector<8x256xbf16>
    %c0_88 = arith.constant 0 : index
    %c0_89 = arith.constant 0 : index
    %c0_90 = arith.constant 0 : index
    %128 = vector.load %arg7[%c0_88, %c0_89, %c0_90] : memref<2x8x256xbf16, #tpu.memory_space<vmem>>, vector<1x8x256xbf16>
    %129 = vector.shape_cast %128 : vector<1x8x256xbf16> to vector<8x256xbf16>
    %130 = vector.shape_cast %127 : vector<8x256xbf16> to vector<1x8x256xbf16>
    tpu.vector_store %arg7[%c0_88, %c0_89, %c0_90], %130 {strides = array<i32>} : memref<2x8x256xbf16, #tpu.memory_space<vmem>>, vector<1x8x256xbf16>,
    %131 = vector.extract_strided_slice %125 {offsets = [0, 256], sizes = [8, 256], strides = [1, 1]} : vector<8x512xf32> to vector<8x256xf32>
    %132 = arith.truncf %131 : vector<8x256xf32> to vector<8x256xbf16>
    %c1_91 = arith.constant 1 : index
    %c0_92 = arith.constant 0 : index
    %c0_93 = arith.constant 0 : index
    %133 = vector.load %arg7[%c1_91, %c0_92, %c0_93] : memref<2x8x256xbf16, #tpu.memory_space<vmem>>, vector<1x8x256xbf16>
    %134 = vector.shape_cast %133 : vector<1x8x256xbf16> to vector<8x256xbf16>
    %135 = vector.shape_cast %132 : vector<8x256xbf16> to vector<1x8x256xbf16>
    tpu.vector_store %arg7[%c1_91, %c0_92, %c0_93], %135 {strides = array<i32>} : memref<2x8x256xbf16, #tpu.memory_space<vmem>>, vector<1x8x256xbf16>,
    %cst_94 = arith.constant dense<0.000000e+00> : vector<8xf32>
    %136 = vector.multi_reduction <add>, %125, %cst_94 [1] : vector<8x512xf32> to vector<8xf32>
    %137 = vector.shape_cast %136 : vector<8xf32> to vector<8x1xf32>
    %c0_95 = arith.constant 0 : index
    %c0_96 = arith.constant 0 : index
    %c0_97 = arith.constant 0 : index
    %138 = vector.load %arg8[%c0_95, %c0_96, %c0_97] : memref<1x8x1xf32, #tpu.memory_space<vmem>>, vector<1x8x1xf32>
    %139 = vector.shape_cast %138 : vector<1x8x1xf32> to vector<8x1xf32>
    %140 = vector.shape_cast %137 : vector<8x1xf32> to vector<1x8x1xf32>
    tpu.vector_store %arg8[%c0_95, %c0_96, %c0_97], %140 {strides = array<i32>} : memref<1x8x1xf32, #tpu.memory_space<vmem>>, vector<1x8x1xf32>,
    %141 = arith.mulf %125, %125 : vector<8x512xf32>
    %cst_98 = arith.constant dense<0.000000e+00> : vector<8xf32>
    %142 = vector.multi_reduction <add>, %141, %cst_98 [1] : vector<8x512xf32> to vector<8xf32>
    %143 = vector.shape_cast %142 : vector<8xf32> to vector<8x1xf32>
    %c0_99 = arith.constant 0 : index
    %c0_100 = arith.constant 0 : index
    %c0_101 = arith.constant 0 : index
    %144 = vector.load %arg9[%c0_99, %c0_100, %c0_101] : memref<1x8x1xf32, #tpu.memory_space<vmem>>, vector<1x8x1xf32>
    %145 = vector.shape_cast %144 : vector<1x8x1xf32> to vector<8x1xf32>
    %146 = vector.shape_cast %143 : vector<8x1xf32> to vector<1x8x1xf32>
    tpu.vector_store %arg9[%c0_99, %c0_100, %c0_101], %146 {strides = array<i32>} : memref<1x8x1xf32, #tpu.memory_space<vmem>>, vector<1x8x1xf32>,
    %c32_102 = arith.constant 32 : index
    %c0_103 = arith.constant 0 : index
    %147 = vector.load %arg13[%c32_102, %c0_103] : memref<72x512xbf16, #tpu.memory_space<vmem>>, vector<8x512xbf16>
    %c0_104 = arith.constant 0 : index
    %c0_105 = arith.constant 0 : index
    %148 = vector.load %arg5[%c0_104, %c0_105] : memref<8x8xbf16, #tpu.memory_space<vmem>>, vector<8x8xbf16>
    %cst_106 = arith.constant dense<0.000000e+00> : vector<8x512xf32>
    %149 = tpu.matmul %148, %147, %cst_106 {dimension_numbers = #tpu.dot_dimension_numbers<[1], [0], [0], [1], [0, 0, 1, 1], [], []>} : vector<8x8xbf16>, vector<8x512xbf16>, vector<8x512xf32> -> vector<8x512xf32>
    %c0_107 = arith.constant 0 : index
    %c0_108 = arith.constant 0 : index
    %150 = vector.load %arg6[%c0_107, %c0_108] : memref<8x1xf32, #tpu.memory_space<vmem>>, vector<8x1xf32>
    %151 = vector.broadcast %150 : vector<8x1xf32> to vector<8x512xf32>
    %152 = arith.addf %149, %151 : vector<8x512xf32>
    %153 = vector.extract_strided_slice %152 {offsets = [0, 0], sizes = [8, 256], strides = [1, 1]} : vector<8x512xf32> to vector<8x256xf32>
    %154 = arith.truncf %153 : vector<8x256xf32> to vector<8x256xbf16>
    %c0_109 = arith.constant 0 : index
    %c0_110 = arith.constant 0 : index
    %c0_111 = arith.constant 0 : index
    %155 = vector.load %arg10[%c0_109, %c0_110, %c0_111] : memref<2x8x256xbf16, #tpu.memory_space<vmem>>, vector<1x8x256xbf16>
    %156 = vector.shape_cast %155 : vector<1x8x256xbf16> to vector<8x256xbf16>
    %157 = vector.shape_cast %154 : vector<8x256xbf16> to vector<1x8x256xbf16>
    tpu.vector_store %arg10[%c0_109, %c0_110, %c0_111], %157 {strides = array<i32>} : memref<2x8x256xbf16, #tpu.memory_space<vmem>>, vector<1x8x256xbf16>,
    %158 = vector.extract_strided_slice %152 {offsets = [0, 256], sizes = [8, 256], strides = [1, 1]} : vector<8x512xf32> to vector<8x256xf32>
    %159 = arith.truncf %158 : vector<8x256xf32> to vector<8x256xbf16>
    %c1_112 = arith.constant 1 : index
    %c0_113 = arith.constant 0 : index
    %c0_114 = arith.constant 0 : index
    %160 = vector.load %arg10[%c1_112, %c0_113, %c0_114] : memref<2x8x256xbf16, #tpu.memory_space<vmem>>, vector<1x8x256xbf16>
    %161 = vector.shape_cast %160 : vector<1x8x256xbf16> to vector<8x256xbf16>
    %162 = vector.shape_cast %159 : vector<8x256xbf16> to vector<1x8x256xbf16>
    tpu.vector_store %arg10[%c1_112, %c0_113, %c0_114], %162 {strides = array<i32>} : memref<2x8x256xbf16, #tpu.memory_space<vmem>>, vector<1x8x256xbf16>,
    %cst_115 = arith.constant dense<0.000000e+00> : vector<8xf32>
    %163 = vector.multi_reduction <add>, %152, %cst_115 [1] : vector<8x512xf32> to vector<8xf32>
    %164 = vector.shape_cast %163 : vector<8xf32> to vector<8x1xf32>
    %c0_116 = arith.constant 0 : index
    %c0_117 = arith.constant 0 : index
    %c0_118 = arith.constant 0 : index
    %165 = vector.load %arg11[%c0_116, %c0_117, %c0_118] : memref<1x8x1xf32, #tpu.memory_space<vmem>>, vector<1x8x1xf32>
    %166 = vector.shape_cast %165 : vector<1x8x1xf32> to vector<8x1xf32>
    %167 = vector.shape_cast %164 : vector<8x1xf32> to vector<1x8x1xf32>
    tpu.vector_store %arg11[%c0_116, %c0_117, %c0_118], %167 {strides = array<i32>} : memref<1x8x1xf32, #tpu.memory_space<vmem>>, vector<1x8x1xf32>,
    %168 = arith.mulf %152, %152 : vector<8x512xf32>
    %cst_119 = arith.constant dense<0.000000e+00> : vector<8xf32>
    %169 = vector.multi_reduction <add>, %168, %cst_119 [1] : vector<8x512xf32> to vector<8xf32>
    %170 = vector.shape_cast %169 : vector<8xf32> to vector<8x1xf32>
    %c0_120 = arith.constant 0 : index
    %c0_121 = arith.constant 0 : index
    %c0_122 = arith.constant 0 : index
    %171 = vector.load %arg12[%c0_120, %c0_121, %c0_122] : memref<1x8x1xf32, #tpu.memory_space<vmem>>, vector<1x8x1xf32>
    %172 = vector.shape_cast %171 : vector<1x8x1xf32> to vector<8x1xf32>
    %173 = vector.shape_cast %170 : vector<8x1xf32> to vector<1x8x1xf32>
    tpu.vector_store %arg12[%c0_120, %c0_121, %c0_122], %173 {strides = array<i32>} : memref<1x8x1xf32, #tpu.memory_space<vmem>>, vector<1x8x1xf32>,
    return
  }
  func.func @transform_0(%arg0: i32) -> (i32, i32, i32) {
    %c0_i32 = arith.constant 0 : i32
    %c0_i32_0 = arith.constant 0 : i32
    %c0_i32_1 = arith.constant 0 : i32
    return %arg0, %c0_i32, %c0_i32_0 : i32, i32, i32
  }
  func.func @transform_1(%arg0: i32) -> (i32, i32, i32) {
    %c0_i32 = arith.constant 0 : i32
    %c0_i32_0 = arith.constant 0 : i32
    %c0_i32_1 = arith.constant 0 : i32
    %c0_i32_2 = arith.constant 0 : i32
    return %c0_i32, %c0_i32_0, %c0_i32_1 : i32, i32, i32
  }
  func.func @transform_2(%arg0: i32) -> (i32, i32) {
    %c0_i32 = arith.constant 0 : i32
    %c0_i32_0 = arith.constant 0 : i32
    %c0_i32_1 = arith.constant 0 : i32
    return %c0_i32, %c0_i32_0 : i32, i32
  }
  func.func @transform_3(%arg0: i32) -> (i32, i32) {
    %c0_i32 = arith.constant 0 : i32
    %c0_i32_0 = arith.constant 0 : i32
    %c0_i32_1 = arith.constant 0 : i32
    return %c0_i32, %c0_i32_0 : i32, i32
  }
  func.func @transform_4(%arg0: i32) -> (i32, i32) {
    %c0_i32 = arith.constant 0 : i32
    %c0_i32_0 = arith.constant 0 : i32
    %c0_i32_1 = arith.constant 0 : i32
    return %c0_i32, %c0_i32_0 : i32, i32
  }
  func.func @transform_5(%arg0: i32) -> (i32, i32) {
    %c0_i32 = arith.constant 0 : i32
    %c0_i32_0 = arith.constant 0 : i32
    %c0_i32_1 = arith.constant 0 : i32
    return %c0_i32, %c0_i32_0 : i32, i32
  }
  func.func @transform_6(%arg0: i32) -> (i32, i32, i32) {
    %c0_i32 = arith.constant 0 : i32
    %c0_i32_0 = arith.constant 0 : i32
    %c0_i32_1 = arith.constant 0 : i32
    return %arg0, %c0_i32, %c0_i32_0 : i32, i32, i32
  }
  func.func @transform_7(%arg0: i32) -> (i32, i32, i32) {
    %c0_i32 = arith.constant 0 : i32
    %c0_i32_0 = arith.constant 0 : i32
    %c0_i32_1 = arith.constant 0 : i32
    return %arg0, %c0_i32, %c0_i32_0 : i32, i32, i32
  }
  func.func @transform_8(%arg0: i32) -> (i32, i32, i32) {
    %c0_i32 = arith.constant 0 : i32
    %c0_i32_0 = arith.constant 0 : i32
    %c0_i32_1 = arith.constant 0 : i32
    return %arg0, %c0_i32, %c0_i32_0 : i32, i32, i32
  }
  func.func @transform_9(%arg0: i32) -> (i32, i32, i32) {
    %c0_i32 = arith.constant 0 : i32
    %c0_i32_0 = arith.constant 0 : i32
    %c0_i32_1 = arith.constant 0 : i32
    return %arg0, %c0_i32, %c0_i32_0 : i32, i32, i32
  }
  func.func @transform_10(%arg0: i32) -> (i32, i32, i32) {
    %c0_i32 = arith.constant 0 : i32
    %c0_i32_0 = arith.constant 0 : i32
    %c0_i32_1 = arith.constant 0 : i32
    return %arg0, %c0_i32, %c0_i32_0 : i32, i32, i32
  }
  func.func @transform_11(%arg0: i32) -> (i32, i32, i32) {
    %c0_i32 = arith.constant 0 : i32
    %c0_i32_0 = arith.constant 0 : i32
    %c0_i32_1 = arith.constant 0 : i32
    return %arg0, %c0_i32, %c0_i32_0 : i32, i32, i32
  }
}

module attributes {stable_mosaic.version = 11 : i64} {
  func.func @_pass3_kernel(%arg0: i32, %arg1: memref<2x8x256xbf16, #tpu.memory_space<vmem>>, %arg2: memref<2x8x256xbf16, #tpu.memory_space<vmem>>, %arg3: memref<8x1xf32, #tpu.memory_space<vmem>>, %arg4: memref<8x1xf32, #tpu.memory_space<vmem>>, %arg5: memref<8x1xf32, #tpu.memory_space<vmem>>, %arg6: memref<8x1xf32, #tpu.memory_space<vmem>>, %arg7: memref<2x8x256xf32, #tpu.memory_space<vmem>>) attributes {dimension_semantics = [#tpu.dimension_semantics<parallel>], iteration_bounds = array<i64: 1>, scalar_prefetch = 0 : i64, scratch_operands = 0 : i64, tpu.core_type = #tpu.core_type<tc>, window_params = [{transform_indices = @transform_0, window_bounds = array<i64: 2, 8, 256>}, {transform_indices = @transform_1, window_bounds = array<i64: 2, 8, 256>}, {pipeline_mode = #tpu.pipeline_mode<synchronous>, transform_indices = @transform_2, window_bounds = array<i64: 8, 1>}, {pipeline_mode = #tpu.pipeline_mode<synchronous>, transform_indices = @transform_3, window_bounds = array<i64: 8, 1>}, {pipeline_mode = #tpu.pipeline_mode<synchronous>, transform_indices = @transform_4, window_bounds = array<i64: 8, 1>}, {pipeline_mode = #tpu.pipeline_mode<synchronous>, transform_indices = @transform_5, window_bounds = array<i64: 8, 1>}, {transform_indices = @transform_6, window_bounds = array<i64: 2, 8, 256>}]} {
    %c0 = arith.constant 0 : index
    %c0_0 = arith.constant 0 : index
    %0 = vector.load %arg3[%c0, %c0_0] : memref<8x1xf32, #tpu.memory_space<vmem>>, vector<8x1xf32>
    %c0_1 = arith.constant 0 : index
    %c0_2 = arith.constant 0 : index
    %1 = vector.load %arg4[%c0_1, %c0_2] : memref<8x1xf32, #tpu.memory_space<vmem>>, vector<8x1xf32>
    %c0_3 = arith.constant 0 : index
    %c0_4 = arith.constant 0 : index
    %2 = vector.load %arg5[%c0_3, %c0_4] : memref<8x1xf32, #tpu.memory_space<vmem>>, vector<8x1xf32>
    %c0_5 = arith.constant 0 : index
    %c0_6 = arith.constant 0 : index
    %3 = vector.load %arg6[%c0_5, %c0_6] : memref<8x1xf32, #tpu.memory_space<vmem>>, vector<8x1xf32>
    %c0_7 = arith.constant 0 : index
    %c0_8 = arith.constant 0 : index
    %c0_9 = arith.constant 0 : index
    %4 = vector.load %arg1[%c0_7, %c0_8, %c0_9] : memref<2x8x256xbf16, #tpu.memory_space<vmem>>, vector<1x8x256xbf16>
    %5 = vector.shape_cast %4 : vector<1x8x256xbf16> to vector<8x256xbf16>
    %6 = arith.extf %5 : vector<8x256xbf16> to vector<8x256xf32>
    %7 = vector.broadcast %0 : vector<8x1xf32> to vector<8x256xf32>
    %8 = arith.mulf %6, %7 : vector<8x256xf32>
    %9 = vector.broadcast %1 : vector<8x1xf32> to vector<8x256xf32>
    %10 = arith.addf %8, %9 : vector<8x256xf32>
    %c0_10 = arith.constant 0 : index
    %c0_11 = arith.constant 0 : index
    %c0_12 = arith.constant 0 : index
    %11 = vector.load %arg2[%c0_10, %c0_11, %c0_12] : memref<2x8x256xbf16, #tpu.memory_space<vmem>>, vector<1x8x256xbf16>
    %12 = vector.shape_cast %11 : vector<1x8x256xbf16> to vector<8x256xbf16>
    %13 = arith.extf %12 : vector<8x256xbf16> to vector<8x256xf32>
    %14 = vector.broadcast %2 : vector<8x1xf32> to vector<8x256xf32>
    %15 = arith.mulf %13, %14 : vector<8x256xf32>
    %16 = arith.addf %10, %15 : vector<8x256xf32>
    %17 = vector.broadcast %3 : vector<8x1xf32> to vector<8x256xf32>
    %18 = arith.addf %16, %17 : vector<8x256xf32>
    %cst = arith.constant 0.000000e+00 : f32
    %19 = vector.broadcast %cst : f32 to vector<8x256xf32>
    %20 = arith.maximumf %18, %19 : vector<8x256xf32>
    %c0_13 = arith.constant 0 : index
    %c0_14 = arith.constant 0 : index
    %c0_15 = arith.constant 0 : index
    %21 = vector.load %arg7[%c0_13, %c0_14, %c0_15] : memref<2x8x256xf32, #tpu.memory_space<vmem>>, vector<1x8x256xf32>
    %22 = vector.shape_cast %21 : vector<1x8x256xf32> to vector<8x256xf32>
    %23 = vector.shape_cast %20 : vector<8x256xf32> to vector<1x8x256xf32>
    tpu.vector_store %arg7[%c0_13, %c0_14, %c0_15], %23 {strides = array<i32>} : memref<2x8x256xf32, #tpu.memory_space<vmem>>, vector<1x8x256xf32>,
    %c1 = arith.constant 1 : index
    %c0_16 = arith.constant 0 : index
    %c0_17 = arith.constant 0 : index
    %24 = vector.load %arg1[%c1, %c0_16, %c0_17] : memref<2x8x256xbf16, #tpu.memory_space<vmem>>, vector<1x8x256xbf16>
    %25 = vector.shape_cast %24 : vector<1x8x256xbf16> to vector<8x256xbf16>
    %26 = arith.extf %25 : vector<8x256xbf16> to vector<8x256xf32>
    %27 = vector.broadcast %0 : vector<8x1xf32> to vector<8x256xf32>
    %28 = arith.mulf %26, %27 : vector<8x256xf32>
    %29 = vector.broadcast %1 : vector<8x1xf32> to vector<8x256xf32>
    %30 = arith.addf %28, %29 : vector<8x256xf32>
    %c1_18 = arith.constant 1 : index
    %c0_19 = arith.constant 0 : index
    %c0_20 = arith.constant 0 : index
    %31 = vector.load %arg2[%c1_18, %c0_19, %c0_20] : memref<2x8x256xbf16, #tpu.memory_space<vmem>>, vector<1x8x256xbf16>
    %32 = vector.shape_cast %31 : vector<1x8x256xbf16> to vector<8x256xbf16>
    %33 = arith.extf %32 : vector<8x256xbf16> to vector<8x256xf32>
    %34 = vector.broadcast %2 : vector<8x1xf32> to vector<8x256xf32>
    %35 = arith.mulf %33, %34 : vector<8x256xf32>
    %36 = arith.addf %30, %35 : vector<8x256xf32>
    %37 = vector.broadcast %3 : vector<8x1xf32> to vector<8x256xf32>
    %38 = arith.addf %36, %37 : vector<8x256xf32>
    %cst_21 = arith.constant 0.000000e+00 : f32
    %39 = vector.broadcast %cst_21 : f32 to vector<8x256xf32>
    %40 = arith.maximumf %38, %39 : vector<8x256xf32>
    %c1_22 = arith.constant 1 : index
    %c0_23 = arith.constant 0 : index
    %c0_24 = arith.constant 0 : index
    %41 = vector.load %arg7[%c1_22, %c0_23, %c0_24] : memref<2x8x256xf32, #tpu.memory_space<vmem>>, vector<1x8x256xf32>
    %42 = vector.shape_cast %41 : vector<1x8x256xf32> to vector<8x256xf32>
    %43 = vector.shape_cast %40 : vector<8x256xf32> to vector<1x8x256xf32>
    tpu.vector_store %arg7[%c1_22, %c0_23, %c0_24], %43 {strides = array<i32>} : memref<2x8x256xf32, #tpu.memory_space<vmem>>, vector<1x8x256xf32>,
    return
  }
  func.func @transform_0(%arg0: i32) -> (i32, i32, i32) {
    %c0_i32 = arith.constant 0 : i32
    %c0_i32_0 = arith.constant 0 : i32
    %c0_i32_1 = arith.constant 0 : i32
    return %arg0, %c0_i32, %c0_i32_0 : i32, i32, i32
  }
  func.func @transform_1(%arg0: i32) -> (i32, i32, i32) {
    %c0_i32 = arith.constant 0 : i32
    %c0_i32_0 = arith.constant 0 : i32
    %c0_i32_1 = arith.constant 0 : i32
    return %arg0, %c0_i32, %c0_i32_0 : i32, i32, i32
  }
  func.func @transform_2(%arg0: i32) -> (i32, i32) {
    %c0_i32 = arith.constant 0 : i32
    %c0_i32_0 = arith.constant 0 : i32
    %c0_i32_1 = arith.constant 0 : i32
    return %c0_i32, %c0_i32_0 : i32, i32
  }
  func.func @transform_3(%arg0: i32) -> (i32, i32) {
    %c0_i32 = arith.constant 0 : i32
    %c0_i32_0 = arith.constant 0 : i32
    %c0_i32_1 = arith.constant 0 : i32
    return %c0_i32, %c0_i32_0 : i32, i32
  }
  func.func @transform_4(%arg0: i32) -> (i32, i32) {
    %c0_i32 = arith.constant 0 : i32
    %c0_i32_0 = arith.constant 0 : i32
    %c0_i32_1 = arith.constant 0 : i32
    return %c0_i32, %c0_i32_0 : i32, i32
  }
  func.func @transform_5(%arg0: i32) -> (i32, i32) {
    %c0_i32 = arith.constant 0 : i32
    %c0_i32_0 = arith.constant 0 : i32
    %c0_i32_1 = arith.constant 0 : i32
    return %c0_i32, %c0_i32_0 : i32, i32
  }
  func.func @transform_6(%arg0: i32) -> (i32, i32, i32) {
    %c0_i32 = arith.constant 0 : i32
    %c0_i32_0 = arith.constant 0 : i32
    %c0_i32_1 = arith.constant 0 : i32
    return %arg0, %c0_i32, %c0_i32_0 : i32, i32, i32
  }
}

module attributes {stable_mosaic.version = 11 : i64} {
  func.func @_pass2_kernel(%arg0: i32, %arg1: memref<2x8x256xbf16, #tpu.memory_space<vmem>>, %arg2: memref<9x1x256xf32, #tpu.memory_space<vmem>>, %arg3: memref<8x1xf32, #tpu.memory_space<vmem>>, %arg4: memref<8x1xf32, #tpu.memory_space<vmem>>, %arg5: memref<8x72xbf16, #tpu.memory_space<vmem>>, %arg6: memref<8x1xf32, #tpu.memory_space<vmem>>, %arg7: memref<2x8x256xbf16, #tpu.memory_space<vmem>>, %arg8: memref<1x8x1xf32, #tpu.memory_space<vmem>>, %arg9: memref<1x8x1xf32, #tpu.memory_space<vmem>>, %arg10: memref<72x512xbf16, #tpu.memory_space<vmem>>) attributes {dimension_semantics = [#tpu.dimension_semantics<parallel>], iteration_bounds = array<i64: 1>, scalar_prefetch = 0 : i64, scratch_operands = 1 : i64, tpu.core_type = #tpu.core_type<tc>, window_params = [{transform_indices = @transform_0, window_bounds = array<i64: 2, 8, 256>}, {pipeline_mode = #tpu.pipeline_mode<synchronous>, transform_indices = @transform_1, window_bounds = array<i64: 9, 1, 256>}, {pipeline_mode = #tpu.pipeline_mode<synchronous>, transform_indices = @transform_2, window_bounds = array<i64: 8, 1>}, {pipeline_mode = #tpu.pipeline_mode<synchronous>, transform_indices = @transform_3, window_bounds = array<i64: 8, 1>}, {pipeline_mode = #tpu.pipeline_mode<synchronous>, transform_indices = @transform_4, window_bounds = array<i64: 8, 72>}, {pipeline_mode = #tpu.pipeline_mode<synchronous>, transform_indices = @transform_5, window_bounds = array<i64: 8, 1>}, {transform_indices = @transform_6, window_bounds = array<i64: 2, 8, 256>}, {transform_indices = @transform_7, window_bounds = array<i64: 1, 8, 1>}, {transform_indices = @transform_8, window_bounds = array<i64: 1, 8, 1>}]} {
    %c0 = arith.constant 0 : index
    %c0_0 = arith.constant 0 : index
    %0 = vector.load %arg3[%c0, %c0_0] : memref<8x1xf32, #tpu.memory_space<vmem>>, vector<8x1xf32>
    %c0_1 = arith.constant 0 : index
    %c0_2 = arith.constant 0 : index
    %1 = vector.load %arg4[%c0_1, %c0_2] : memref<8x1xf32, #tpu.memory_space<vmem>>, vector<8x1xf32>
    %c0_3 = arith.constant 0 : index
    %c0_4 = arith.constant 0 : index
    %c0_5 = arith.constant 0 : index
    %2 = vector.load %arg1[%c0_3, %c0_4, %c0_5] : memref<2x8x256xbf16, #tpu.memory_space<vmem>>, vector<1x8x256xbf16>
    %3 = vector.shape_cast %2 : vector<1x8x256xbf16> to vector<8x256xbf16>
    %4 = arith.extf %3 : vector<8x256xbf16> to vector<8x256xf32>
    %5 = vector.broadcast %0 : vector<8x1xf32> to vector<8x256xf32>
    %6 = arith.mulf %4, %5 : vector<8x256xf32>
    %7 = vector.broadcast %1 : vector<8x1xf32> to vector<8x256xf32>
    %8 = arith.addf %6, %7 : vector<8x256xf32>
    %cst = arith.constant 0.000000e+00 : f32
    %9 = vector.broadcast %cst : f32 to vector<8x256xf32>
    %10 = arith.maximumf %8, %9 : vector<8x256xf32>
    %c17_i32 = arith.constant 17 : i32
    %11 = tpu.dynamic_rotate %10 by %c17_i32 dim 1 : vector<8x256xf32>, i32 -> vector<8x256xf32>
    %c0_6 = arith.constant 0 : index
    %c0_7 = arith.constant 0 : index
    %c0_8 = arith.constant 0 : index
    %12 = vector.load %arg2[%c0_6, %c0_7, %c0_8] : memref<9x1x256xf32, #tpu.memory_space<vmem>>, vector<1x1x256xf32>
    %13 = vector.shape_cast %12 : vector<1x1x256xf32> to vector<1x256xf32>
    %14 = vector.broadcast %13 : vector<1x256xf32> to vector<8x256xf32>
    %15 = arith.mulf %11, %14 : vector<8x256xf32>
    %16 = arith.truncf %15 : vector<8x256xf32> to vector<8x256xbf16>
    %c0_9 = arith.constant 0 : index
    %c0_10 = arith.constant 0 : index
    %17 = vector.load %arg10[%c0_9, %c0_10] : memref<72x512xbf16, #tpu.memory_space<vmem>>, vector<8x256xbf16>
    tpu.vector_store %arg10[%c0_9, %c0_10], %16 {strides = array<i32>} : memref<72x512xbf16, #tpu.memory_space<vmem>>, vector<8x256xbf16>,
    %c16_i32 = arith.constant 16 : i32
    %18 = tpu.dynamic_rotate %10 by %c16_i32 dim 1 : vector<8x256xf32>, i32 -> vector<8x256xf32>
    %c1 = arith.constant 1 : index
    %c0_11 = arith.constant 0 : index
    %c0_12 = arith.constant 0 : index
    %19 = vector.load %arg2[%c1, %c0_11, %c0_12] : memref<9x1x256xf32, #tpu.memory_space<vmem>>, vector<1x1x256xf32>
    %20 = vector.shape_cast %19 : vector<1x1x256xf32> to vector<1x256xf32>
    %21 = vector.broadcast %20 : vector<1x256xf32> to vector<8x256xf32>
    %22 = arith.mulf %18, %21 : vector<8x256xf32>
    %23 = arith.truncf %22 : vector<8x256xf32> to vector<8x256xbf16>
    %c8 = arith.constant 8 : index
    %c0_13 = arith.constant 0 : index
    %24 = vector.load %arg10[%c8, %c0_13] : memref<72x512xbf16, #tpu.memory_space<vmem>>, vector<8x256xbf16>
    tpu.vector_store %arg10[%c8, %c0_13], %23 {strides = array<i32>} : memref<72x512xbf16, #tpu.memory_space<vmem>>, vector<8x256xbf16>,
    %c15_i32 = arith.constant 15 : i32
    %25 = tpu.dynamic_rotate %10 by %c15_i32 dim 1 : vector<8x256xf32>, i32 -> vector<8x256xf32>
    %c2 = arith.constant 2 : index
    %c0_14 = arith.constant 0 : index
    %c0_15 = arith.constant 0 : index
    %26 = vector.load %arg2[%c2, %c0_14, %c0_15] : memref<9x1x256xf32, #tpu.memory_space<vmem>>, vector<1x1x256xf32>
    %27 = vector.shape_cast %26 : vector<1x1x256xf32> to vector<1x256xf32>
    %28 = vector.broadcast %27 : vector<1x256xf32> to vector<8x256xf32>
    %29 = arith.mulf %25, %28 : vector<8x256xf32>
    %30 = arith.truncf %29 : vector<8x256xf32> to vector<8x256xbf16>
    %c16 = arith.constant 16 : index
    %c0_16 = arith.constant 0 : index
    %31 = vector.load %arg10[%c16, %c0_16] : memref<72x512xbf16, #tpu.memory_space<vmem>>, vector<8x256xbf16>
    tpu.vector_store %arg10[%c16, %c0_16], %30 {strides = array<i32>} : memref<72x512xbf16, #tpu.memory_space<vmem>>, vector<8x256xbf16>,
    %c1_i32 = arith.constant 1 : i32
    %32 = tpu.dynamic_rotate %10 by %c1_i32 dim 1 : vector<8x256xf32>, i32 -> vector<8x256xf32>
    %c3 = arith.constant 3 : index
    %c0_17 = arith.constant 0 : index
    %c0_18 = arith.constant 0 : index
    %33 = vector.load %arg2[%c3, %c0_17, %c0_18] : memref<9x1x256xf32, #tpu.memory_space<vmem>>, vector<1x1x256xf32>
    %34 = vector.shape_cast %33 : vector<1x1x256xf32> to vector<1x256xf32>
    %35 = vector.broadcast %34 : vector<1x256xf32> to vector<8x256xf32>
    %36 = arith.mulf %32, %35 : vector<8x256xf32>
    %37 = arith.truncf %36 : vector<8x256xf32> to vector<8x256xbf16>
    %c24 = arith.constant 24 : index
    %c0_19 = arith.constant 0 : index
    %38 = vector.load %arg10[%c24, %c0_19] : memref<72x512xbf16, #tpu.memory_space<vmem>>, vector<8x256xbf16>
    tpu.vector_store %arg10[%c24, %c0_19], %37 {strides = array<i32>} : memref<72x512xbf16, #tpu.memory_space<vmem>>, vector<8x256xbf16>,
    %39 = arith.truncf %10 : vector<8x256xf32> to vector<8x256xbf16>
    %c32 = arith.constant 32 : index
    %c0_20 = arith.constant 0 : index
    %40 = vector.load %arg10[%c32, %c0_20] : memref<72x512xbf16, #tpu.memory_space<vmem>>, vector<8x256xbf16>
    tpu.vector_store %arg10[%c32, %c0_20], %39 {strides = array<i32>} : memref<72x512xbf16, #tpu.memory_space<vmem>>, vector<8x256xbf16>,
    %c255_i32 = arith.constant 255 : i32
    %41 = tpu.dynamic_rotate %10 by %c255_i32 dim 1 : vector<8x256xf32>, i32 -> vector<8x256xf32>
    %c5 = arith.constant 5 : index
    %c0_21 = arith.constant 0 : index
    %c0_22 = arith.constant 0 : index
    %42 = vector.load %arg2[%c5, %c0_21, %c0_22] : memref<9x1x256xf32, #tpu.memory_space<vmem>>, vector<1x1x256xf32>
    %43 = vector.shape_cast %42 : vector<1x1x256xf32> to vector<1x256xf32>
    %44 = vector.broadcast %43 : vector<1x256xf32> to vector<8x256xf32>
    %45 = arith.mulf %41, %44 : vector<8x256xf32>
    %46 = arith.truncf %45 : vector<8x256xf32> to vector<8x256xbf16>
    %c40 = arith.constant 40 : index
    %c0_23 = arith.constant 0 : index
    %47 = vector.load %arg10[%c40, %c0_23] : memref<72x512xbf16, #tpu.memory_space<vmem>>, vector<8x256xbf16>
    tpu.vector_store %arg10[%c40, %c0_23], %46 {strides = array<i32>} : memref<72x512xbf16, #tpu.memory_space<vmem>>, vector<8x256xbf16>,
    %c241_i32 = arith.constant 241 : i32
    %48 = tpu.dynamic_rotate %10 by %c241_i32 dim 1 : vector<8x256xf32>, i32 -> vector<8x256xf32>
    %c6 = arith.constant 6 : index
    %c0_24 = arith.constant 0 : index
    %c0_25 = arith.constant 0 : index
    %49 = vector.load %arg2[%c6, %c0_24, %c0_25] : memref<9x1x256xf32, #tpu.memory_space<vmem>>, vector<1x1x256xf32>
    %50 = vector.shape_cast %49 : vector<1x1x256xf32> to vector<1x256xf32>
    %51 = vector.broadcast %50 : vector<1x256xf32> to vector<8x256xf32>
    %52 = arith.mulf %48, %51 : vector<8x256xf32>
    %53 = arith.truncf %52 : vector<8x256xf32> to vector<8x256xbf16>
    %c48 = arith.constant 48 : index
    %c0_26 = arith.constant 0 : index
    %54 = vector.load %arg10[%c48, %c0_26] : memref<72x512xbf16, #tpu.memory_space<vmem>>, vector<8x256xbf16>
    tpu.vector_store %arg10[%c48, %c0_26], %53 {strides = array<i32>} : memref<72x512xbf16, #tpu.memory_space<vmem>>, vector<8x256xbf16>,
    %c240_i32 = arith.constant 240 : i32
    %55 = tpu.dynamic_rotate %10 by %c240_i32 dim 1 : vector<8x256xf32>, i32 -> vector<8x256xf32>
    %c7 = arith.constant 7 : index
    %c0_27 = arith.constant 0 : index
    %c0_28 = arith.constant 0 : index
    %56 = vector.load %arg2[%c7, %c0_27, %c0_28] : memref<9x1x256xf32, #tpu.memory_space<vmem>>, vector<1x1x256xf32>
    %57 = vector.shape_cast %56 : vector<1x1x256xf32> to vector<1x256xf32>
    %58 = vector.broadcast %57 : vector<1x256xf32> to vector<8x256xf32>
    %59 = arith.mulf %55, %58 : vector<8x256xf32>
    %60 = arith.truncf %59 : vector<8x256xf32> to vector<8x256xbf16>
    %c56 = arith.constant 56 : index
    %c0_29 = arith.constant 0 : index
    %61 = vector.load %arg10[%c56, %c0_29] : memref<72x512xbf16, #tpu.memory_space<vmem>>, vector<8x256xbf16>
    tpu.vector_store %arg10[%c56, %c0_29], %60 {strides = array<i32>} : memref<72x512xbf16, #tpu.memory_space<vmem>>, vector<8x256xbf16>,
    %c239_i32 = arith.constant 239 : i32
    %62 = tpu.dynamic_rotate %10 by %c239_i32 dim 1 : vector<8x256xf32>, i32 -> vector<8x256xf32>
    %c8_30 = arith.constant 8 : index
    %c0_31 = arith.constant 0 : index
    %c0_32 = arith.constant 0 : index
    %63 = vector.load %arg2[%c8_30, %c0_31, %c0_32] : memref<9x1x256xf32, #tpu.memory_space<vmem>>, vector<1x1x256xf32>
    %64 = vector.shape_cast %63 : vector<1x1x256xf32> to vector<1x256xf32>
    %65 = vector.broadcast %64 : vector<1x256xf32> to vector<8x256xf32>
    %66 = arith.mulf %62, %65 : vector<8x256xf32>
    %67 = arith.truncf %66 : vector<8x256xf32> to vector<8x256xbf16>
    %c64 = arith.constant 64 : index
    %c0_33 = arith.constant 0 : index
    %68 = vector.load %arg10[%c64, %c0_33] : memref<72x512xbf16, #tpu.memory_space<vmem>>, vector<8x256xbf16>
    tpu.vector_store %arg10[%c64, %c0_33], %67 {strides = array<i32>} : memref<72x512xbf16, #tpu.memory_space<vmem>>, vector<8x256xbf16>,
    %c1_34 = arith.constant 1 : index
    %c0_35 = arith.constant 0 : index
    %c0_36 = arith.constant 0 : index
    %69 = vector.load %arg1[%c1_34, %c0_35, %c0_36] : memref<2x8x256xbf16, #tpu.memory_space<vmem>>, vector<1x8x256xbf16>
    %70 = vector.shape_cast %69 : vector<1x8x256xbf16> to vector<8x256xbf16>
    %71 = arith.extf %70 : vector<8x256xbf16> to vector<8x256xf32>
    %72 = vector.broadcast %0 : vector<8x1xf32> to vector<8x256xf32>
    %73 = arith.mulf %71, %72 : vector<8x256xf32>
    %74 = vector.broadcast %1 : vector<8x1xf32> to vector<8x256xf32>
    %75 = arith.addf %73, %74 : vector<8x256xf32>
    %cst_37 = arith.constant 0.000000e+00 : f32
    %76 = vector.broadcast %cst_37 : f32 to vector<8x256xf32>
    %77 = arith.maximumf %75, %76 : vector<8x256xf32>
    %c17_i32_38 = arith.constant 17 : i32
    %78 = tpu.dynamic_rotate %77 by %c17_i32_38 dim 1 : vector<8x256xf32>, i32 -> vector<8x256xf32>
    %c0_39 = arith.constant 0 : index
    %c0_40 = arith.constant 0 : index
    %c0_41 = arith.constant 0 : index
    %79 = vector.load %arg2[%c0_39, %c0_40, %c0_41] : memref<9x1x256xf32, #tpu.memory_space<vmem>>, vector<1x1x256xf32>
    %80 = vector.shape_cast %79 : vector<1x1x256xf32> to vector<1x256xf32>
    %81 = vector.broadcast %80 : vector<1x256xf32> to vector<8x256xf32>
    %82 = arith.mulf %78, %81 : vector<8x256xf32>
    %83 = arith.truncf %82 : vector<8x256xf32> to vector<8x256xbf16>
    %c0_42 = arith.constant 0 : index
    %c256 = arith.constant 256 : index
    %84 = vector.load %arg10[%c0_42, %c256] : memref<72x512xbf16, #tpu.memory_space<vmem>>, vector<8x256xbf16>
    tpu.vector_store %arg10[%c0_42, %c256], %83 {strides = array<i32>} : memref<72x512xbf16, #tpu.memory_space<vmem>>, vector<8x256xbf16>,
    %c16_i32_43 = arith.constant 16 : i32
    %85 = tpu.dynamic_rotate %77 by %c16_i32_43 dim 1 : vector<8x256xf32>, i32 -> vector<8x256xf32>
    %c1_44 = arith.constant 1 : index
    %c0_45 = arith.constant 0 : index
    %c0_46 = arith.constant 0 : index
    %86 = vector.load %arg2[%c1_44, %c0_45, %c0_46] : memref<9x1x256xf32, #tpu.memory_space<vmem>>, vector<1x1x256xf32>
    %87 = vector.shape_cast %86 : vector<1x1x256xf32> to vector<1x256xf32>
    %88 = vector.broadcast %87 : vector<1x256xf32> to vector<8x256xf32>
    %89 = arith.mulf %85, %88 : vector<8x256xf32>
    %90 = arith.truncf %89 : vector<8x256xf32> to vector<8x256xbf16>
    %c8_47 = arith.constant 8 : index
    %c256_48 = arith.constant 256 : index
    %91 = vector.load %arg10[%c8_47, %c256_48] : memref<72x512xbf16, #tpu.memory_space<vmem>>, vector<8x256xbf16>
    tpu.vector_store %arg10[%c8_47, %c256_48], %90 {strides = array<i32>} : memref<72x512xbf16, #tpu.memory_space<vmem>>, vector<8x256xbf16>,
    %c15_i32_49 = arith.constant 15 : i32
    %92 = tpu.dynamic_rotate %77 by %c15_i32_49 dim 1 : vector<8x256xf32>, i32 -> vector<8x256xf32>
    %c2_50 = arith.constant 2 : index
    %c0_51 = arith.constant 0 : index
    %c0_52 = arith.constant 0 : index
    %93 = vector.load %arg2[%c2_50, %c0_51, %c0_52] : memref<9x1x256xf32, #tpu.memory_space<vmem>>, vector<1x1x256xf32>
    %94 = vector.shape_cast %93 : vector<1x1x256xf32> to vector<1x256xf32>
    %95 = vector.broadcast %94 : vector<1x256xf32> to vector<8x256xf32>
    %96 = arith.mulf %92, %95 : vector<8x256xf32>
    %97 = arith.truncf %96 : vector<8x256xf32> to vector<8x256xbf16>
    %c16_53 = arith.constant 16 : index
    %c256_54 = arith.constant 256 : index
    %98 = vector.load %arg10[%c16_53, %c256_54] : memref<72x512xbf16, #tpu.memory_space<vmem>>, vector<8x256xbf16>
    tpu.vector_store %arg10[%c16_53, %c256_54], %97 {strides = array<i32>} : memref<72x512xbf16, #tpu.memory_space<vmem>>, vector<8x256xbf16>,
    %c1_i32_55 = arith.constant 1 : i32
    %99 = tpu.dynamic_rotate %77 by %c1_i32_55 dim 1 : vector<8x256xf32>, i32 -> vector<8x256xf32>
    %c3_56 = arith.constant 3 : index
    %c0_57 = arith.constant 0 : index
    %c0_58 = arith.constant 0 : index
    %100 = vector.load %arg2[%c3_56, %c0_57, %c0_58] : memref<9x1x256xf32, #tpu.memory_space<vmem>>, vector<1x1x256xf32>
    %101 = vector.shape_cast %100 : vector<1x1x256xf32> to vector<1x256xf32>
    %102 = vector.broadcast %101 : vector<1x256xf32> to vector<8x256xf32>
    %103 = arith.mulf %99, %102 : vector<8x256xf32>
    %104 = arith.truncf %103 : vector<8x256xf32> to vector<8x256xbf16>
    %c24_59 = arith.constant 24 : index
    %c256_60 = arith.constant 256 : index
    %105 = vector.load %arg10[%c24_59, %c256_60] : memref<72x512xbf16, #tpu.memory_space<vmem>>, vector<8x256xbf16>
    tpu.vector_store %arg10[%c24_59, %c256_60], %104 {strides = array<i32>} : memref<72x512xbf16, #tpu.memory_space<vmem>>, vector<8x256xbf16>,
    %106 = arith.truncf %77 : vector<8x256xf32> to vector<8x256xbf16>
    %c32_61 = arith.constant 32 : index
    %c256_62 = arith.constant 256 : index
    %107 = vector.load %arg10[%c32_61, %c256_62] : memref<72x512xbf16, #tpu.memory_space<vmem>>, vector<8x256xbf16>
    tpu.vector_store %arg10[%c32_61, %c256_62], %106 {strides = array<i32>} : memref<72x512xbf16, #tpu.memory_space<vmem>>, vector<8x256xbf16>,
    %c255_i32_63 = arith.constant 255 : i32
    %108 = tpu.dynamic_rotate %77 by %c255_i32_63 dim 1 : vector<8x256xf32>, i32 -> vector<8x256xf32>
    %c5_64 = arith.constant 5 : index
    %c0_65 = arith.constant 0 : index
    %c0_66 = arith.constant 0 : index
    %109 = vector.load %arg2[%c5_64, %c0_65, %c0_66] : memref<9x1x256xf32, #tpu.memory_space<vmem>>, vector<1x1x256xf32>
    %110 = vector.shape_cast %109 : vector<1x1x256xf32> to vector<1x256xf32>
    %111 = vector.broadcast %110 : vector<1x256xf32> to vector<8x256xf32>
    %112 = arith.mulf %108, %111 : vector<8x256xf32>
    %113 = arith.truncf %112 : vector<8x256xf32> to vector<8x256xbf16>
    %c40_67 = arith.constant 40 : index
    %c256_68 = arith.constant 256 : index
    %114 = vector.load %arg10[%c40_67, %c256_68] : memref<72x512xbf16, #tpu.memory_space<vmem>>, vector<8x256xbf16>
    tpu.vector_store %arg10[%c40_67, %c256_68], %113 {strides = array<i32>} : memref<72x512xbf16, #tpu.memory_space<vmem>>, vector<8x256xbf16>,
    %c241_i32_69 = arith.constant 241 : i32
    %115 = tpu.dynamic_rotate %77 by %c241_i32_69 dim 1 : vector<8x256xf32>, i32 -> vector<8x256xf32>
    %c6_70 = arith.constant 6 : index
    %c0_71 = arith.constant 0 : index
    %c0_72 = arith.constant 0 : index
    %116 = vector.load %arg2[%c6_70, %c0_71, %c0_72] : memref<9x1x256xf32, #tpu.memory_space<vmem>>, vector<1x1x256xf32>
    %117 = vector.shape_cast %116 : vector<1x1x256xf32> to vector<1x256xf32>
    %118 = vector.broadcast %117 : vector<1x256xf32> to vector<8x256xf32>
    %119 = arith.mulf %115, %118 : vector<8x256xf32>
    %120 = arith.truncf %119 : vector<8x256xf32> to vector<8x256xbf16>
    %c48_73 = arith.constant 48 : index
    %c256_74 = arith.constant 256 : index
    %121 = vector.load %arg10[%c48_73, %c256_74] : memref<72x512xbf16, #tpu.memory_space<vmem>>, vector<8x256xbf16>
    tpu.vector_store %arg10[%c48_73, %c256_74], %120 {strides = array<i32>} : memref<72x512xbf16, #tpu.memory_space<vmem>>, vector<8x256xbf16>,
    %c240_i32_75 = arith.constant 240 : i32
    %122 = tpu.dynamic_rotate %77 by %c240_i32_75 dim 1 : vector<8x256xf32>, i32 -> vector<8x256xf32>
    %c7_76 = arith.constant 7 : index
    %c0_77 = arith.constant 0 : index
    %c0_78 = arith.constant 0 : index
    %123 = vector.load %arg2[%c7_76, %c0_77, %c0_78] : memref<9x1x256xf32, #tpu.memory_space<vmem>>, vector<1x1x256xf32>
    %124 = vector.shape_cast %123 : vector<1x1x256xf32> to vector<1x256xf32>
    %125 = vector.broadcast %124 : vector<1x256xf32> to vector<8x256xf32>
    %126 = arith.mulf %122, %125 : vector<8x256xf32>
    %127 = arith.truncf %126 : vector<8x256xf32> to vector<8x256xbf16>
    %c56_79 = arith.constant 56 : index
    %c256_80 = arith.constant 256 : index
    %128 = vector.load %arg10[%c56_79, %c256_80] : memref<72x512xbf16, #tpu.memory_space<vmem>>, vector<8x256xbf16>
    tpu.vector_store %arg10[%c56_79, %c256_80], %127 {strides = array<i32>} : memref<72x512xbf16, #tpu.memory_space<vmem>>, vector<8x256xbf16>,
    %c239_i32_81 = arith.constant 239 : i32
    %129 = tpu.dynamic_rotate %77 by %c239_i32_81 dim 1 : vector<8x256xf32>, i32 -> vector<8x256xf32>
    %c8_82 = arith.constant 8 : index
    %c0_83 = arith.constant 0 : index
    %c0_84 = arith.constant 0 : index
    %130 = vector.load %arg2[%c8_82, %c0_83, %c0_84] : memref<9x1x256xf32, #tpu.memory_space<vmem>>, vector<1x1x256xf32>
    %131 = vector.shape_cast %130 : vector<1x1x256xf32> to vector<1x256xf32>
    %132 = vector.broadcast %131 : vector<1x256xf32> to vector<8x256xf32>
    %133 = arith.mulf %129, %132 : vector<8x256xf32>
    %134 = arith.truncf %133 : vector<8x256xf32> to vector<8x256xbf16>
    %c64_85 = arith.constant 64 : index
    %c256_86 = arith.constant 256 : index
    %135 = vector.load %arg10[%c64_85, %c256_86] : memref<72x512xbf16, #tpu.memory_space<vmem>>, vector<8x256xbf16>
    tpu.vector_store %arg10[%c64_85, %c256_86], %134 {strides = array<i32>} : memref<72x512xbf16, #tpu.memory_space<vmem>>, vector<8x256xbf16>,
    %c0_87 = arith.constant 0 : index
    %c0_88 = arith.constant 0 : index
    %136 = vector.load %arg5[%c0_87, %c0_88] : memref<8x72xbf16, #tpu.memory_space<vmem>>, vector<8x72xbf16>
    %c0_89 = arith.constant 0 : index
    %c0_90 = arith.constant 0 : index
    %137 = vector.load %arg10[%c0_89, %c0_90] : memref<72x512xbf16, #tpu.memory_space<vmem>>, vector<72x512xbf16>
    %cst_91 = arith.constant dense<0.000000e+00> : vector<8x512xf32>
    %138 = tpu.matmul %136, %137, %cst_91 {dimension_numbers = #tpu.dot_dimension_numbers<[1], [0], [0], [1], [0, 0, 1, 1], [], []>} : vector<8x72xbf16>, vector<72x512xbf16>, vector<8x512xf32> -> vector<8x512xf32>
    %c0_92 = arith.constant 0 : index
    %c0_93 = arith.constant 0 : index
    %139 = vector.load %arg6[%c0_92, %c0_93] : memref<8x1xf32, #tpu.memory_space<vmem>>, vector<8x1xf32>
    %140 = vector.broadcast %139 : vector<8x1xf32> to vector<8x512xf32>
    %141 = arith.addf %138, %140 : vector<8x512xf32>
    %142 = vector.extract_strided_slice %141 {offsets = [0, 0], sizes = [8, 256], strides = [1, 1]} : vector<8x512xf32> to vector<8x256xf32>
    %143 = arith.truncf %142 : vector<8x256xf32> to vector<8x256xbf16>
    %c0_94 = arith.constant 0 : index
    %c0_95 = arith.constant 0 : index
    %c0_96 = arith.constant 0 : index
    %144 = vector.load %arg7[%c0_94, %c0_95, %c0_96] : memref<2x8x256xbf16, #tpu.memory_space<vmem>>, vector<1x8x256xbf16>
    %145 = vector.shape_cast %144 : vector<1x8x256xbf16> to vector<8x256xbf16>
    %146 = vector.shape_cast %143 : vector<8x256xbf16> to vector<1x8x256xbf16>
    tpu.vector_store %arg7[%c0_94, %c0_95, %c0_96], %146 {strides = array<i32>} : memref<2x8x256xbf16, #tpu.memory_space<vmem>>, vector<1x8x256xbf16>,
    %147 = vector.extract_strided_slice %141 {offsets = [0, 256], sizes = [8, 256], strides = [1, 1]} : vector<8x512xf32> to vector<8x256xf32>
    %148 = arith.truncf %147 : vector<8x256xf32> to vector<8x256xbf16>
    %c1_97 = arith.constant 1 : index
    %c0_98 = arith.constant 0 : index
    %c0_99 = arith.constant 0 : index
    %149 = vector.load %arg7[%c1_97, %c0_98, %c0_99] : memref<2x8x256xbf16, #tpu.memory_space<vmem>>, vector<1x8x256xbf16>
    %150 = vector.shape_cast %149 : vector<1x8x256xbf16> to vector<8x256xbf16>
    %151 = vector.shape_cast %148 : vector<8x256xbf16> to vector<1x8x256xbf16>
    tpu.vector_store %arg7[%c1_97, %c0_98, %c0_99], %151 {strides = array<i32>} : memref<2x8x256xbf16, #tpu.memory_space<vmem>>, vector<1x8x256xbf16>,
    %cst_100 = arith.constant dense<0.000000e+00> : vector<8xf32>
    %152 = vector.multi_reduction <add>, %141, %cst_100 [1] : vector<8x512xf32> to vector<8xf32>
    %153 = vector.shape_cast %152 : vector<8xf32> to vector<8x1xf32>
    %c0_101 = arith.constant 0 : index
    %c0_102 = arith.constant 0 : index
    %c0_103 = arith.constant 0 : index
    %154 = vector.load %arg8[%c0_101, %c0_102, %c0_103] : memref<1x8x1xf32, #tpu.memory_space<vmem>>, vector<1x8x1xf32>
    %155 = vector.shape_cast %154 : vector<1x8x1xf32> to vector<8x1xf32>
    %156 = vector.shape_cast %153 : vector<8x1xf32> to vector<1x8x1xf32>
    tpu.vector_store %arg8[%c0_101, %c0_102, %c0_103], %156 {strides = array<i32>} : memref<1x8x1xf32, #tpu.memory_space<vmem>>, vector<1x8x1xf32>,
    %157 = arith.mulf %141, %141 : vector<8x512xf32>
    %cst_104 = arith.constant dense<0.000000e+00> : vector<8xf32>
    %158 = vector.multi_reduction <add>, %157, %cst_104 [1] : vector<8x512xf32> to vector<8xf32>
    %159 = vector.shape_cast %158 : vector<8xf32> to vector<8x1xf32>
    %c0_105 = arith.constant 0 : index
    %c0_106 = arith.constant 0 : index
    %c0_107 = arith.constant 0 : index
    %160 = vector.load %arg9[%c0_105, %c0_106, %c0_107] : memref<1x8x1xf32, #tpu.memory_space<vmem>>, vector<1x8x1xf32>
    %161 = vector.shape_cast %160 : vector<1x8x1xf32> to vector<8x1xf32>
    %162 = vector.shape_cast %159 : vector<8x1xf32> to vector<1x8x1xf32>
    tpu.vector_store %arg9[%c0_105, %c0_106, %c0_107], %162 {strides = array<i32>} : memref<1x8x1xf32, #tpu.memory_space<vmem>>, vector<1x8x1xf32>,
    return
  }
  func.func @transform_0(%arg0: i32) -> (i32, i32, i32) {
    %c0_i32 = arith.constant 0 : i32
    %c0_i32_0 = arith.constant 0 : i32
    %c0_i32_1 = arith.constant 0 : i32
    return %arg0, %c0_i32, %c0_i32_0 : i32, i32, i32
  }
  func.func @transform_1(%arg0: i32) -> (i32, i32, i32) {
    %c0_i32 = arith.constant 0 : i32
    %c0_i32_0 = arith.constant 0 : i32
    %c0_i32_1 = arith.constant 0 : i32
    %c0_i32_2 = arith.constant 0 : i32
    return %c0_i32, %c0_i32_0, %c0_i32_1 : i32, i32, i32
  }
  func.func @transform_2(%arg0: i32) -> (i32, i32) {
    %c0_i32 = arith.constant 0 : i32
    %c0_i32_0 = arith.constant 0 : i32
    %c0_i32_1 = arith.constant 0 : i32
    return %c0_i32, %c0_i32_0 : i32, i32
  }
  func.func @transform_3(%arg0: i32) -> (i32, i32) {
    %c0_i32 = arith.constant 0 : i32
    %c0_i32_0 = arith.constant 0 : i32
    %c0_i32_1 = arith.constant 0 : i32
    return %c0_i32, %c0_i32_0 : i32, i32
  }
  func.func @transform_4(%arg0: i32) -> (i32, i32) {
    %c0_i32 = arith.constant 0 : i32
    %c0_i32_0 = arith.constant 0 : i32
    %c0_i32_1 = arith.constant 0 : i32
    return %c0_i32, %c0_i32_0 : i32, i32
  }
  func.func @transform_5(%arg0: i32) -> (i32, i32) {
    %c0_i32 = arith.constant 0 : i32
    %c0_i32_0 = arith.constant 0 : i32
    %c0_i32_1 = arith.constant 0 : i32
    return %c0_i32, %c0_i32_0 : i32, i32
  }
  func.func @transform_6(%arg0: i32) -> (i32, i32, i32) {
    %c0_i32 = arith.constant 0 : i32
    %c0_i32_0 = arith.constant 0 : i32
    %c0_i32_1 = arith.constant 0 : i32
    return %arg0, %c0_i32, %c0_i32_0 : i32, i32, i32
  }
  func.func @transform_7(%arg0: i32) -> (i32, i32, i32) {
    %c0_i32 = arith.constant 0 : i32
    %c0_i32_0 = arith.constant 0 : i32
    %c0_i32_1 = arith.constant 0 : i32
    return %arg0, %c0_i32, %c0_i32_0 : i32, i32, i32
  }
  func.func @transform_8(%arg0: i32) -> (i32, i32, i32) {
    %c0_i32 = arith.constant 0 : i32
    %c0_i32_0 = arith.constant 0 : i32
    %c0_i32_1 = arith.constant 0 : i32
    return %arg0, %c0_i32, %c0_i32_0 : i32, i32, i32
  }
}

</mosaic_0001>

<bundles_post_ra>
// kernel: resblock_pallas.5
= control target key start
LH: loop header
LB: loop body
LE: loop exit
PB: predicated region body
PF: predicated region fallthrough
CT: control target
= control target key end

     0   :  { %v101_v0 = vmov 0   ;;  %s173_s4 = inlined_call_operand.vmem [shape: f32[8,1], index: 4, kind: input, shape index: {}]   ;;  %s174_s2 = inlined_call_operand.vmem [shape: f32[8,1], index: 2, kind: input, shape index: {}]   ;;  %s175_s5 = inlined_call_operand.vmem [shape: f32[8,1], index: 5, kind: input, shape index: {}]   ;;  %s176_s3 = inlined_call_operand.vmem [shape: f32[8,1], index: 3, kind: input, shape index: {}]   ;;  %s177_s1 = inlined_call_operand.vmem [shape: bf16[2,8,256], index: 1, kind: input, shape index: {}]   ;;  %s178_s0 = inlined_call_operand.vmem [shape: bf16[2,8,256], index: 0, kind: input, shape index: {}]   ;;  %s179_s6 = inlined_call_operand.vmem [shape: f32[2,8,256], index: 6, kind: output, shape index: {}]  }
   0x1   :  { %100 = vset.pattern.permute.xlu1 %v101_v0  ;;  %99 = vset.pattern.permute.xlu0 %v101_v0  ;;  %v25_v1 = vld [vmem:[%s173_s4] sm:$0xff]  ;;  %v95_v6 = vld [vmem:[%s177_s1 + $0x8] sm:$0xff] }
   0x2   :  { %v23_v2 = vld [vmem:[%s174_s2] sm:$0xff]  ;;  %49 = vperm.xlu1 %100, %v25_v1   ;;  %v94_v8 = vld [vmem:[%s178_s0 + $0x8] sm:$0xff]  ;;  %v77_v11 = vunpack.c.l.bf16 %v95_v6  ;;  %v78_v12 = vunpack.c.h.bf16 %v95_v6 }
   0x3   :  { %32 = vperm.xlu0 %99, %v23_v2   ;;  %v26_v3 = vld [vmem:[%s175_s5] sm:$0xff]  ;;  %v69_v15 = vunpack.c.l.bf16 %v94_v8  ;;  %v70_v16 = vunpack.c.h.bf16 %v94_v8 }
   0x4   :  { %v24_v4 = vld [vmem:[%s176_s3] sm:$0xff] }
   0x5   :  { %v44_v5 = vld [vmem:[%s177_s1] sm:$0xff] }
   0x6   :  { %58 = vperm.xlu1 %100, %v26_v3   ;;  %v27_v7 = vld [vmem:[%s178_s0] sm:$0xff]  ;;  %v45_v9 = vunpack.c.l.bf16 %v44_v5  ;;  %v46_v10 = vunpack.c.h.bf16 %v44_v5 }
   0x7   :  { %39 = vperm.xlu0 %99, %v24_v4   ;;  %v28_v13 = vunpack.c.l.bf16 %v27_v7  ;;  %v29_v14 = vunpack.c.h.bf16 %v27_v7 }
  0x81   :  { %v50_v18 = vpop.permute.xlu1 %49 }
  0x82   :  { %v33_v17 = vpop.permute.xlu0 %32  ;;  %v52_v19 = vmul.f32 %v50_v18, %v45_v9  ;;  %v53_v20 = vmul.f32 %v50_v18, %v46_v10  ;;  %v79_v21 = vmul.f32 %v77_v11, %v50_v18  ;;  %v80_v22 = vmul.f32 %v78_v12, %v50_v18 }
  0x83   :  { %v35_v23 = vmul.f32 %v33_v17, %v28_v13  ;;  %v36_v24 = vmul.f32 %v33_v17, %v29_v14  ;;  %v71_v25 = vmul.f32 %v69_v15, %v33_v17  ;;  %v72_v26 = vmul.f32 %v70_v16, %v33_v17 }
  0x85   :  { %v59_v36 = vpop.permute.xlu1 %58 }
  0x86   :  { %v40_v27 = vpop.permute.xlu0 %39 }
  0x87   :  { %v42_v28 = vadd.f32 %v40_v27, %v35_v23  ;;  %v43_v29 = vadd.f32 %v40_v27, %v36_v24  ;;  %v73_v30 = vadd.f32 %v71_v25, %v40_v27  ;;  %v74_v31 = vadd.f32 %v72_v26, %v40_v27 }
  0x89   :  { %v54_v32 = vadd.f32 %v52_v19, %v42_v28  ;;  %v55_v33 = vadd.f32 %v53_v20, %v43_v29  ;;  %v81_v34 = vadd.f32 %v79_v21, %v73_v30  ;;  %v82_v35 = vadd.f32 %v80_v22, %v74_v31 }
  0x8b   :  { %v61_v37 = vadd.f32 %v59_v36, %v54_v32  ;;  %v62_v38 = vadd.f32 %v59_v36, %v55_v33  ;;  %v83_v39 = vadd.f32 %v81_v34, %v59_v36  ;;  %v84_v40 = vadd.f32 %v82_v35, %v59_v36 }
  0x8d   :  { %v63_v41 = vmax.f32 %v61_v37, 0.0  ;;  %v64_v42 = vmax.f32 %v62_v38, 0.0  ;;  %v85_v43 = vmax.f32 %v83_v39, 0.0  ;;  %v86_v44 = vmax.f32 %v84_v40, 0.0 }
  0x8f   :  { %65 = vst [vmem:[%s179_s6] sm:$0xff] %v63_v41  ;;  %66 = vst [vmem:[%s179_s6 + $0x8] sm:$0xff] %v64_v42 }
  0x90   :  { %96 = vst [vmem:[%s179_s6 + $0x10] sm:$0xff] %v85_v43  ;;  %97 = vst [vmem:[%s179_s6 + $0x18] sm:$0xff] %v86_v44 }

// kernel: resblock_pallas.4
= control target key start
LH: loop header
LB: loop body
LE: loop exit
PB: predicated region body
PF: predicated region fallthrough
CT: control target
= control target key end

     0   :  { %v929_v0 = vmov 0   ;;  %s933_s13 = smov 1   ;;  %s934_s14 = smov 127   ;;  %v52_v24 = vlaneseq  ;;  %vm676_vm8 = vcmask 1043456   ;;  %vm672_vm9 = vcmask 588800   ;;  %s1219_s2 = inlined_call_operand.vmem [shape: f32[8,1], index: 2, kind: input, shape index: {}]   ;;  %s1220_s3 = inlined_call_operand.vmem [shape: f32[8,1], index: 3, kind: input, shape index: {}]   ;;  %s1221_s0 = inlined_call_operand.vmem [shape: bf16[2,8,256], index: 0, kind: input, shape index: {}]   ;;  %s1222_s5 = inlined_call_operand.vmem [shape: f32[8,1], index: 5, kind: input, shape index: {}]   ;;  %s1223_s1 = inlined_call_operand.vmem [shape: f32[9,1,256], index: 1, kind: input, shape index: {}]   ;;  %s1224_s4 = inlined_call_operand.vmem [shape: bf16[8,72], index: 4, kind: input, shape index: {}]   ;;  %s1225_s6 = inlined_call_operand.vmem [shape: bf16[2,8,256], index: 6, kind: output, shape index: {0}]   ;;  %s1226_s7 = inlined_call_operand.vmem [shape: f32[1,8,1], index: 7, kind: output, shape index: {1}]   ;;  %s1227_s8 = inlined_call_operand.vmem [shape: f32[1,8,1], index: 8, kind: output, shape index: {2}]  }
   0x1   :  { %928 = vset.pattern.permute.xlu0 %v929_v0  ;;  %v27_v1 = vld [vmem:[%s1219_s2] sm:$0xff]  ;;  %721 = vmatprep.mubr.bf16.mxu0 %v929_v0  ;;  %v835_v4 = vld [vmem:[%s1221_s0 + $0x8] sm:$0xff]  ;;  %s930_s2 = smov 16   ;;  %s935_s15 = smov 113   ;;  %vm795_vm10 = vcmask 7168  }
   0x2   :  { %34 = vperm.xlu0 %928, %v27_v1   ;;  %762 = vmatprep.mubr.bf16.mxu1 %v929_v0  ;;  %v28_v2 = vld [vmem:[%s1220_s3] sm:$0xff]  ;;  %v308_v8 = vunpack.c.l.bf16 %v835_v4  ;;  %v309_v17 = vunpack.c.h.bf16 %v835_v4  ;;  %s931_s3 = smov 17   ;;  %s936_s16 = smov 112   ;;  %v60_v25 = vshrl.u32 %v52_v24, 7  ;;  %v1038_v28 = vand.u32 127, %v52_v24 }
   0x3   :  { %v29_v3 = vld [vmem:[%s1221_s0] sm:$0xff]  ;;  %s932_s0 = smov 15   ;;  %s937_s17 = smov 111  }
   0x4   :  { %v30_v5 = vunpack.c.l.bf16 %v29_v3  ;;  %v31_v7 = vunpack.c.h.bf16 %v29_v3  ;;  %v576_v23 = vld [vmem:[%s1222_s5] sm:$0xff]  ;;  %v1040_v29 = vsub.s32 0, %v60_v25  ;;  %v1045_v31 = vsub.s32 1, %v60_v25 }
   0x5   :  { %v57_v30 = vld [vmem:[%s1223_s1] sm:$0x3]  ;;  %v820_v32 = vld [vmem:[%s1223_s1 + $0x2] sm:$0x3]  ;;  %vm54_vm0 = vcmp.lt.s32.totalorder %v1038_v28, 17  ;;  %vm84_vm1 = vcmp.lt.s32.totalorder %v1038_v28, 16 }
   0x6   :  { %41 = vperm.xlu0 %928, %v28_v2   ;;  %v62_v35 = vrot.slane %v57_v30, %v1040_v29  ;;  %v93_v36 = vrot.slane %v820_v32, %v1040_v29  ;;  %v66_v37 = vrot.slane %v57_v30, %v1045_v31  ;;  %v97_v38 = vrot.slane %v820_v32, %v1045_v31  ;;  %v322_v49 = vld [vmem:[%s1223_s1] sm:$0x3]  ;;  %v837_v50 = vld [vmem:[%s1223_s1 + $0x2] sm:$0x3]  ;;  %v822_v3 = vld [vmem:[%s1223_s1 + $0x4] sm:$0x3] }
   0x7   :  { %v327_v55 = vrot.slane %v322_v49, %v1040_v29  ;;  %v356_v56 = vrot.slane %v837_v50, %v1040_v29  ;;  %v331_v57 = vrot.slane %v322_v49, %v1045_v31  ;;  %v360_v58 = vrot.slane %v837_v50, %v1045_v31  ;;  %v839_v32 = vld [vmem:[%s1223_s1 + $0x4] sm:$0x3] }
   0x8   :  { %vm115_vm2 = vcmp.lt.s32.totalorder %v1038_v28, 15  ;;  %vm146_vm3 = vcmp.lt.s32.totalorder %v1038_v28, 1  ;;  %vm186_vm4 = vcmp.lt.s32.totalorder %v1038_v28, 127  ;;  %vm217_vm5 = vcmp.lt.s32.totalorder %v1038_v28, 113 }
   0x9   :  { %vm248_vm6 = vcmp.lt.s32.totalorder %v1038_v28, 112  ;;  %vm279_vm7 = vcmp.lt.s32.totalorder %v1038_v28, 111 }
  0x81   :  { %v35_v6 = vpop.permute.xlu0 %34 }
  0x82   :  { %v37_v9 = vmul.f32 %v35_v6, %v30_v5  ;;  %v38_v11 = vmul.f32 %v35_v6, %v31_v7  ;;  %v310_v12 = vmul.f32 %v308_v8, %v35_v6  ;;  %v311_v20 = vmul.f32 %v309_v17, %v35_v6  ;;  %v824_v6 = vld [vmem:[%s1223_s1 + $0x6] sm:$0x3] }
  0x85   :  { %v42_v10 = vpop.permute.xlu0 %41 }
  0x86   :  { %v44_v13 = vadd.f32 %v42_v10, %v37_v9  ;;  %v45_v14 = vadd.f32 %v42_v10, %v38_v11  ;;  %v312_v16 = vadd.f32 %v310_v12, %v42_v10  ;;  %v313_v21 = vadd.f32 %v311_v20, %v42_v10 }
  0x87   :  { %v124_v11 = vrot.slane %v822_v3, %v1040_v29  ;;  %v128_v12 = vrot.slane %v822_v3, %v1045_v31 }
  0x88   :  { %v995_v15 = vmax.f32 %v44_v13, 0.0  ;;  %v999_v18 = vmax.f32 %v45_v14, 0.0  ;;  %v1001_v19 = vmax.f32 %v312_v16, 0.0  ;;  %v1007_v22 = vmax.f32 %v313_v21, 0.0 }
  0x89   :  { %v155_v13 = vrot.slane %v824_v6, %v1040_v29  ;;  %v159_v14 = vrot.slane %v824_v6, %v1045_v31 }
  0x8a   :  { %80 = vrot.lane.b32.xlu0 %v995_v15, %s930_s2  ;;  %48 = vrot.lane.b32.xlu1 %v995_v15, %s931_s3 }
  0x8e   :  { %316 = vrot.lane.b32.xlu0 %v1001_v19, %s931_s3  ;;  %50 = vrot.lane.b32.xlu1 %v999_v18, %s931_s3 }
  0x92   :  { %345 = vrot.lane.b32.xlu0 %v1001_v19, %s930_s2  ;;  %82 = vrot.lane.b32.xlu1 %v999_v18, %s930_s2 }
  0x96   :  { %111 = vrot.lane.b32.xlu0 %v995_v15, %s932_s0  ;;  %318 = vrot.lane.b32.xlu1 %v1007_v22, %s931_s3 }
  0x9a   :  { %142 = vrot.lane.b32.xlu0 %v995_v15, %s933_s13  ;;  %347 = vrot.lane.b32.xlu1 %v1007_v22, %s930_s2 }
  0x9e   :  { %374 = vrot.lane.b32.xlu0 %v1001_v19, %s932_s0  ;;  %113 = vrot.lane.b32.xlu1 %v999_v18, %s932_s0 }
  0xa2   :  { %403 = vrot.lane.b32.xlu0 %v1001_v19, %s933_s13  ;;  %144 = vrot.lane.b32.xlu1 %v999_v18, %s933_s13 }
  0xa6   :  { %182 = vrot.lane.b32.xlu0 %v995_v15, %s934_s14  ;;  %376 = vrot.lane.b32.xlu1 %v1007_v22, %s932_s0 }
  0xaa   :  { %441 = vrot.lane.b32.xlu0 %v1001_v19, %s934_s14  ;;  %405 = vrot.lane.b32.xlu1 %v1007_v22, %s933_s13 }
  0xae   :  { %213 = vrot.lane.b32.xlu0 %v995_v15, %s935_s15  ;;  %184 = vrot.lane.b32.xlu1 %v999_v18, %s934_s14 }
  0xb2   :  { %244 = vrot.lane.b32.xlu0 %v995_v15, %s936_s16  ;;  %443 = vrot.lane.b32.xlu1 %v1007_v22, %s934_s14 }
  0xb6   :  { %470 = vrot.lane.b32.xlu0 %v1001_v19, %s935_s15  ;;  %215 = vrot.lane.b32.xlu1 %v999_v18, %s935_s15 }
  0xba   :  { %499 = vrot.lane.b32.xlu0 %v1001_v19, %s936_s16  ;;  %246 = vrot.lane.b32.xlu1 %v999_v18, %s936_s16 }
  0xbe   :  { %275 = vrot.lane.b32.xlu0 %v995_v15, %s937_s17  ;;  %472 = vrot.lane.b32.xlu1 %v1007_v22, %s935_s15 }
  0xc2   :  { %528 = vrot.lane.b32.xlu0 %v1001_v19, %s937_s17  ;;  %501 = vrot.lane.b32.xlu1 %v1007_v22, %s936_s16 }
  0xc6   :  { %579 = vperm.xlu0 %928, %v576_v23   ;;  %277 = vrot.lane.b32.xlu1 %v999_v18, %s937_s17 }
  0xca   :  { %530 = vrot.lane.b32.xlu1 %v1007_v22, %s937_s17 }
  0xfc   :  { %v81_v26 = vpop.permute.xlu0 %80  ;;  %v49_v27 = vpop.permute.xlu1 %48 }
 0x100   :  { %v317_v33 = vpop.permute.xlu0 %316  ;;  %v51_v34 = vpop.permute.xlu1 %50 }
 0x101   :  { %v55_v39 = vsel %vm54_vm0, %v49_v27, %v51_v34  ;;  %v56_v40 = vsel %vm54_vm0, %v51_v34, %v49_v27 }
 0x102   :  { %v69_v45 = vmul.f32 %v62_v35, %v56_v40  ;;  %v70_v47 = vmul.f32 %v66_v37, %v55_v39  ;;  %v389_v39 = vrot.slane %v839_v32, %v1045_v31 }
 0x104   :  { %v346_v41 = vpop.permute.xlu0 %345  ;;  %v83_v42 = vpop.permute.xlu1 %82 }
 0x105   :  { %v85_v43 = vsel %vm84_vm1, %v81_v26, %v83_v42  ;;  %v86_v44 = vsel %vm84_vm1, %v83_v42, %v81_v26  ;;  %v827_v42 = vld [vmem:[%s1223_s1 + $0xa] sm:$0x3] }
 0x106   :  { %v100_v46 = vmul.f32 %v93_v36, %v86_v44  ;;  %v101_v48 = vmul.f32 %v97_v38, %v85_v43  ;;  %v385_v38 = vrot.slane %v839_v32, %v1040_v29  ;;  %v195_v49 = vrot.slane %v827_v42, %v1040_v29  ;;  %v846_v32 = vld [vmem:[%s1223_s1 + $0xc] sm:$0x3] }
 0x107   :  { %v199_v50 = vrot.slane %v827_v42, %v1045_v31  ;;  %v833_v42 = vld [vmem:[%s1223_s1 + $0x10] sm:$0x3] }
 0x108   :  { %v112_v51 = vpop.permute.xlu0 %111  ;;  %v319_v52 = vpop.permute.xlu1 %318  ;;  %v900_v53 = vpack.c.bf16 %v101_v48, %v70_v47  ;;  %v899_v54 = vpack.c.bf16 %v100_v46, %v69_v45 }
 0x109   :  { %v320_v59 = vsel %vm54_vm0, %v317_v33, %v319_v52  ;;  %v321_v60 = vsel %vm54_vm0, %v319_v52, %v317_v33  ;;  %v841_v33 = vld [vmem:[%s1223_s1 + $0x6] sm:$0x3] }
 0x10a   :  { %689 = vmatprep.subr.bf16.mxu0 %v900_v53  ;;  %v334_v1 = vmul.f32 %v327_v55, %v321_v60  ;;  %v335_v4 = vmul.f32 %v331_v57, %v320_v59  ;;  %v414_v40 = vrot.slane %v841_v33, %v1040_v29  ;;  %v844_v55 = vld [vmem:[%s1223_s1 + $0xa] sm:$0x3] }
 0x10b   :  { %690 = vmatpush1.bf16.msra.mxu0 %v899_v54 }
 0x10c   :  { %v143_v61 = vpop.permute.xlu0 %142  ;;  %v348_v62 = vpop.permute.xlu1 %347 }
 0x10d   :  { %v349_v63 = vsel %vm84_vm1, %v346_v41, %v348_v62  ;;  %v350_v0 = vsel %vm84_vm1, %v348_v62, %v346_v41  ;;  %v418_v41 = vrot.slane %v841_v33, %v1045_v31  ;;  %v848_v33 = vld [vmem:[%s1223_s1 + $0xe] sm:$0x3] }
 0x10e   :  { %v363_v2 = vmul.f32 %v356_v56, %v350_v0  ;;  %v364_v5 = vmul.f32 %v360_v58, %v349_v63  ;;  %v452_v0 = vrot.slane %v844_v55, %v1040_v29 }
 0x110   :  { %v375_v7 = vpop.permute.xlu0 %374  ;;  %v114_v8 = vpop.permute.xlu1 %113  ;;  %v902_v9 = vpack.c.bf16 %v364_v5, %v335_v4  ;;  %v901_v10 = vpack.c.bf16 %v363_v2, %v334_v1  ;;  %v456_v1 = vrot.slane %v844_v55, %v1045_v31  ;;  %v850_v55 = vld [vmem:[%s1223_s1 + $0x10] sm:$0x3] }
 0x111   :  { %v116_v16 = vsel %vm115_vm2, %v112_v51, %v114_v8  ;;  %v117_v17 = vsel %vm115_vm2, %v114_v8, %v112_v51 }
 0x112   :  { %730 = vmatprep.subr.bf16.mxu1 %v902_v9  ;;  %v131_v25 = vmul.f32 %v124_v11, %v117_v17  ;;  %v132_v26 = vmul.f32 %v128_v12, %v116_v16 }
 0x113   :  { %731 = vmatpush1.bf16.msra.mxu1 %v901_v10  ;;  %v829_v10 = vld [vmem:[%s1223_s1 + $0xc] sm:$0x3] }
 0x114   :  { %v404_v20 = vpop.permute.xlu0 %403  ;;  %v145_v21 = vpop.permute.xlu1 %144  ;;  %v230_v16 = vrot.slane %v829_v10, %v1045_v31 }
 0x115   :  { %v147_v23 = vsel %vm146_vm3, %v143_v61, %v145_v21  ;;  %v148_v24 = vsel %vm146_vm3, %v145_v21, %v143_v61 }
 0x116   :  { %v162_v27 = vmul.f32 %v155_v13, %v148_v24  ;;  %v163_v30 = vmul.f32 %v159_v14, %v147_v23  ;;  %v226_v13 = vrot.slane %v829_v10, %v1040_v29 }
 0x118   :  { %v183_v34 = vpop.permute.xlu0 %182  ;;  %v377_v35 = vpop.permute.xlu1 %376  ;;  %v904_v36 = vpack.c.bf16 %v163_v30, %v132_v26  ;;  %v903_v37 = vpack.c.bf16 %v162_v27, %v131_v25 }
 0x119   :  { %v378_v43 = vsel %vm115_vm2, %v375_v7, %v377_v35  ;;  %v379_v44 = vsel %vm115_vm2, %v377_v35, %v375_v7 }
 0x11a   :  { %691 = vmatprep.subr.bf16.mxu0 %v904_v36  ;;  %v392_v51 = vmul.f32 %v385_v38, %v379_v44  ;;  %v393_v52 = vmul.f32 %v389_v39, %v378_v43  ;;  %v481_v38 = vrot.slane %v846_v32, %v1040_v29  ;;  %v485_v39 = vrot.slane %v846_v32, %v1045_v31 }
 0x11b   :  { %692 = vmatpush1.bf16.msra.mxu0 %v903_v37 }
 0x11c   :  { %v442_v45 = vpop.permute.xlu0 %441  ;;  %v406_v46 = vpop.permute.xlu1 %405 }
 0x11d   :  { %v407_v47 = vsel %vm146_vm3, %v404_v20, %v406_v46  ;;  %v408_v48 = vsel %vm146_vm3, %v406_v46, %v404_v20 }
 0x11e   :  { %v421_v53 = vmul.f32 %v414_v40, %v408_v48  ;;  %v422_v54 = vmul.f32 %v418_v41, %v407_v47  ;;  %v510_v40 = vrot.slane %v848_v33, %v1040_v29  ;;  %v514_v41 = vrot.slane %v848_v33, %v1045_v31 }
 0x11f   :  { %v288_v48 = vrot.slane %v833_v42, %v1040_v29 }
 0x120   :  { %v214_v56 = vpop.permute.xlu0 %213  ;;  %v185_v57 = vpop.permute.xlu1 %184  ;;  %v906_v58 = vpack.c.bf16 %v422_v54, %v393_v52  ;;  %v905_v59 = vpack.c.bf16 %v421_v53, %v392_v51 }
 0x121   :  { %v187_v60 = vsel %vm186_vm4, %v183_v34, %v185_v57  ;;  %v188_v61 = vsel %vm186_vm4, %v185_v57, %v183_v34 }
 0x122   :  { %v202_v62 = vmul.f32 %v195_v49, %v187_v60  ;;  %v203_v63 = vmul.f32 %v199_v50, %v188_v61  ;;  %732 = vmatprep.subr.bf16.mxu1 %v906_v58  ;;  %v292_v49 = vrot.slane %v833_v42, %v1045_v31 }
 0x123   :  { %733 = vmatpush1.bf16.msra.mxu1 %v905_v59 }
 0x124   :  { %v245_v2 = vpop.permute.xlu0 %244  ;;  %v444_v3 = vpop.permute.xlu1 %443  ;;  %v908_v4 = vpack.c.bf16 %v203_v63, %v999_v18  ;;  %v907_v5 = vpack.c.bf16 %v202_v62, %v995_v15  ;;  %v831_v18 = vld [vmem:[%s1223_s1 + $0xe] sm:$0x3]  ;;  %v539_v63 = vrot.slane %v850_v55, %v1040_v29 }
 0x125   :  { %v445_v6 = vsel %vm186_vm4, %v442_v45, %v444_v3  ;;  %v446_v7 = vsel %vm186_vm4, %v444_v3, %v442_v45  ;;  %v257_v17 = vrot.slane %v831_v18, %v1040_v29  ;;  %v261_v20 = vrot.slane %v831_v18, %v1045_v31 }
 0x126   :  { %v459_v8 = vmul.f32 %v452_v0, %v445_v6  ;;  %v460_v9 = vmul.f32 %v456_v1, %v446_v7  ;;  %693 = vmatprep.subr.bf16.mxu0 %v908_v4  ;;  %v543_v0 = vrot.slane %v850_v55, %v1045_v31  ;;  %v557_v31 = vld [vmem:[%s1224_s4] sm:$0xf] }
 0x127   :  { %694 = vmatpush1.bf16.msra.mxu0 %v907_v5 }
 0x128   :  { %v216_v15 = vpop.permute.xlu1 %215  ;;  %v910_v11 = vpack.c.bf16 %v460_v9, %v1007_v22  ;;  %v909_v12 = vpack.c.bf16 %v459_v8, %v1001_v19  ;;  %v471_v14 = vpop.permute.xlu0 %470 }
 0x129   :  { %v218_v21 = vsel %vm217_vm5, %v214_v56, %v216_v15  ;;  %v219_v22 = vsel %vm217_vm5, %v216_v15, %v214_v56 }
 0x12a   :  { %734 = vmatprep.subr.bf16.mxu1 %v910_v11  ;;  %v233_v25 = vmul.f32 %v226_v13, %v218_v21  ;;  %v234_v26 = vmul.f32 %v230_v16, %v219_v22 }
 0x12b   :  { %735 = vmatpush1.bf16.msra.mxu1 %v909_v12 }
 0x12c   :  { %v247_v19 = vpop.permute.xlu1 %246  ;;  %v500_v34 = vpop.permute.xlu0 %499 }
 0x12d   :  { %v249_v23 = vsel %vm248_vm6, %v245_v2, %v247_v19  ;;  %v250_v24 = vsel %vm248_vm6, %v247_v19, %v245_v2 }
 0x12e   :  { %v264_v27 = vmul.f32 %v257_v17, %v249_v23  ;;  %v265_v30 = vmul.f32 %v261_v20, %v250_v24 }
 0x130   :  { %v473_v35 = vpop.permute.xlu1 %472  ;;  %v912_v36 = vpack.c.bf16 %v265_v30, %v234_v26  ;;  %v911_v37 = vpack.c.bf16 %v264_v27, %v233_v25  ;;  %v276_v50 = vpop.permute.xlu0 %275 }
 0x131   :  { %v474_v43 = vsel %vm217_vm5, %v471_v14, %v473_v35  ;;  %v475_v44 = vsel %vm217_vm5, %v473_v35, %v471_v14 }
 0x132   :  { %695 = vmatprep.subr.bf16.mxu0 %v912_v36  ;;  %v488_v51 = vmul.f32 %v481_v38, %v474_v43  ;;  %v489_v52 = vmul.f32 %v485_v39, %v475_v44 }
 0x133   :  { %696 = vmatpush1.bf16.msra.mxu0 %v911_v37 }
 0x134   :  { %v502_v45 = vpop.permute.xlu1 %501  ;;  %v529_v1 = vpop.permute.xlu0 %528 }
 0x135   :  { %v503_v46 = vsel %vm248_vm6, %v500_v34, %v502_v45  ;;  %v504_v47 = vsel %vm248_vm6, %v502_v45, %v500_v34 }
 0x136   :  { %v517_v53 = vmul.f32 %v510_v40, %v503_v46  ;;  %v518_v54 = vmul.f32 %v514_v41, %v504_v47 }
 0x138   :  { %v278_v56 = vpop.permute.xlu1 %277  ;;  %v914_v57 = vpack.c.bf16 %v518_v54, %v489_v52  ;;  %v913_v58 = vpack.c.bf16 %v517_v53, %v488_v51 }
 0x139   :  { %v280_v59 = vsel %vm279_vm7, %v276_v50, %v278_v56  ;;  %v281_v60 = vsel %vm279_vm7, %v278_v56, %v276_v50 }
 0x13a   :  { %v295_v61 = vmul.f32 %v288_v48, %v280_v59  ;;  %v296_v62 = vmul.f32 %v292_v49, %v281_v60  ;;  %736 = vmatprep.subr.bf16.mxu1 %v914_v57 }
 0x13b   :  { %737 = vmatpush1.bf16.msra.mxu1 %v913_v58 }
 0x13c   :  { %v915_v2 = vpack.c.bf16 %v295_v61, %v295_v61  ;;  %v916_v3 = vpack.c.bf16 %v296_v62, %v296_v62  ;;  %v531_v4 = vpop.permute.xlu1 %530 }
 0x13d   :  { %v532_v5 = vsel %vm279_vm7, %v529_v1, %v531_v4  ;;  %v533_v6 = vsel %vm279_vm7, %v531_v4, %v529_v1 }
 0x13e   :  { %v546_v7 = vmul.f32 %v539_v63, %v532_v5  ;;  %v547_v8 = vmul.f32 %v543_v0, %v533_v6  ;;  %872 = vmatprep.subr.msk.bf16.mxu0 %vm676_vm8, %v916_v3  ;;  %v678_v29 = vsel %vm676_vm8, %v915_v2, 0 }
 0x13f   :  { %698 = vmatpush1.bf16.msra.mxu0 %v678_v29 }
 0x140   :  { %v917_v9 = vpack.c.bf16 %v546_v7, %v546_v7  ;;  %v918_v10 = vpack.c.bf16 %v547_v8, %v547_v8 }
 0x142   :  { %873 = vmatmul.mubr.msk.bf16.vlgmr.msra.gmra.mrb[0].mxu0 %vm672_vm9, %v557_v31  ;;  %874 = vmatprep.subr.msk.bf16.mxu1 %vm676_vm8, %v918_v10  ;;  %v684_v28 = vsel %vm676_vm8, %v917_v9, 0 }
 0x143   :  { %739 = vmatpush1.bf16.msra.mxu1 %v684_v28 }
 0x145   :  { %v580_v18 = vpop.permute.xlu0 %579 }
 0x146   :  { %875 = vmatmul.mubr.msk.bf16.vlgmr.msra.gmra.mrb[0].mxu1 %vm672_vm9, %v557_v31 }
 0x215   :  { %v723_v15 = vpop.f32.mrb[0].mxu0 }
 0x216   :  { %v724_v11 = vadd.f32 %v723_v15, %v580_v18  ;;  %v725_v12 = vpop.f32.mrb[1].mxu0 }
 0x217   :  { %v726_v13 = vadd.f32 %v725_v12, %v580_v18  ;;  %v727_v14 = vpop.f32.mrb[2].mxu0 }
 0x218   :  { %v797_v16 = vmul.f32 %v724_v11, %v724_v11  ;;  %v728_v17 = vpop.f32.mrb[3].mxu0 }
 0x219   :  { %v897_v20 = vpack.c.bf16 %v726_v13, %v724_v11  ;;  %v790_v21 = vadd.f32 %v726_v13, %v724_v11  ;;  %v798_v22 = vmul.f32 %v726_v13, %v726_v13  ;;  %v764_v19 = vpop.f32.mrb[0].mxu1 }
 0x21a   :  { %v765_v23 = vadd.f32 %v764_v19, %v580_v18  ;;  %v766_v24 = vpop.f32.mrb[1].mxu1 }
 0x21b   :  { %779 = vst [vmem:[%s1225_s6] sm:$0xff] %v897_v20  ;;  %v767_v25 = vadd.f32 %v766_v24, %v580_v18  ;;  %v768_v26 = vpop.f32.mrb[2].mxu1  ;;  %v801_v27 = vadd.f32 %v798_v22, %v797_v16 }
 0x21c   :  { %v799_v30 = vmul.f32 %v765_v23, %v765_v23  ;;  %v769_v32 = vpop.f32.mrb[3].mxu1  ;;  %v791_v33 = vadd.f32 %v790_v21, %v765_v23 }
 0x21d   :  { %v898_v34 = vpack.c.bf16 %v767_v25, %v765_v23  ;;  %v800_v35 = vmul.f32 %v767_v25, %v767_v25 }
 0x21e   :  { %v792_v36 = vadd.f32 %v791_v33, %v767_v25  ;;  %v802_v37 = vadd.f32 %v801_v27, %v799_v30 }
 0x21f   :  { %878 = vst [vmem:[%s1225_s6 + $0x8] sm:$0xff] %v898_v34 }
 0x220   :  { %793 = vadd.xlane.f32.xlu1 %v792_v36  ;;  %v803_v38 = vadd.f32 %v802_v37, %v800_v35 }
 0x222   :  { %804 = vadd.xlane.f32.xlu0 %v803_v38 }
 0x2ad   :  { %v794_v39 = vpop.xlane.xlu1 %793 }
 0x2ae   :  { %796 = vst.msk [vmem:[%s1226_s7] sm:$0xff] %vm795_vm10, %v794_v39 }
 0x2af   :  { %v805_v40 = vpop.xlane.xlu0 %804 }
 0x2b0   :  { %806 = vst.msk [vmem:[%s1227_s8] sm:$0xff] %vm795_vm10, %v805_v40 }

// kernel: resblock_pallas.3
= control target key start
LH: loop header
LB: loop body
LE: loop exit
PB: predicated region body
PF: predicated region fallthrough
CT: control target
= control target key end

     0   :  { %s1089_s19 = smov 16   ;;  %s1090_s20 = smov 17   ;;  %v1096_v4 = vmov 0   ;;  %v36_v7 = vlaneseq  ;;  %vm653_vm8 = vcmask 1043456   ;;  %vm649_vm9 = vcmask 588800   ;;  %s1432_s0 = inlined_call_operand.vmem [shape: f32[2,8,256], index: 0, kind: input, shape index: {}]   ;;  %s1433_s3 = inlined_call_operand.vmem [shape: f32[8,1], index: 3, kind: input, shape index: {}]   ;;  %s1434_s5 = inlined_call_operand.vmem [shape: f32[8,1], index: 5, kind: input, shape index: {}]   ;;  %s1435_s1 = inlined_call_operand.vmem [shape: f32[9,1,256], index: 1, kind: input, shape index: {}]   ;;  %s1436_s2 = inlined_call_operand.vmem [shape: bf16[8,72], index: 2, kind: input, shape index: {}]   ;;  %s1437_s4 = inlined_call_operand.vmem [shape: bf16[8,8], index: 4, kind: input, shape index: {}]   ;;  %s1438_s6 = inlined_call_operand.vmem [shape: bf16[2,8,256], index: 6, kind: output, shape index: {0}]   ;;  %s1439_s9 = inlined_call_operand.vmem [shape: bf16[2,8,256], index: 9, kind: output, shape index: {3}]   ;;  %s1440_s7 = inlined_call_operand.vmem [shape: f32[1,8,1], index: 7, kind: output, shape index: {1}]   ;;  %s1441_s8 = inlined_call_operand.vmem [shape: f32[1,8,1], index: 8, kind: output, shape index: {2}]   ;;  %s1442_s10 = inlined_call_operand.vmem [shape: f32[1,8,1], index: 10, kind: output, shape index: {4}]   ;;  %s1443_s11 = inlined_call_operand.vmem [shape: f32[1,8,1], index: 11, kind: output, shape index: {5}]  }
   0x1   :  { %v1161_v0 = vld [vmem:[%s1432_s0] sm:$0xff]  ;;  %v1168_v1 = vld [vmem:[%s1432_s0 + $0x8] sm:$0xff]  ;;  %v1175_v2 = vld [vmem:[%s1432_s0 + $0x18] sm:$0xff]  ;;  %s1091_s27 = smov 15   ;;  %s1092_s28 = smov 1   ;;  %698 = vmatprep.mubr.bf16.mxu0 %v1096_v4  ;;  %739 = vmatprep.mubr.bf16.mxu1 %v1096_v4  ;;  %vm803_vm10 = vcmask 64512  }
   0x2   :  { %64 = vrot.lane.b32.xlu1 %v1161_v0, %s1089_s19  ;;  %32 = vrot.lane.b32.xlu0 %v1161_v0, %s1090_s20  ;;  %v1180_v3 = vld [vmem:[%s1432_s0 + $0x10] sm:$0xff]  ;;  %s1093_s0 = smov 127   ;;  %s1094_s29 = smov 113   ;;  %v553_v5 = vld [vmem:[%s1433_s3] sm:$0xff]  ;;  %v44_v8 = vshrl.u32 %v36_v7, 7  ;;  %v1220_v9 = vand.u32 127, %v36_v7 }
   0x3   :  { %s1095_s30 = smov 112   ;;  %1087 = vset.pattern.permute.xlu0 %v1096_v4  ;;  %1088 = vset.pattern.permute.xlu1 %v1096_v4  ;;  %s1097_s12 = smov 111   ;;  %v787_v6 = vld [vmem:[%s1434_s5] sm:$0xff]  ;;  %vm772_vm11 = vcmask 7168  }
   0x4   :  { %v1222_v10 = vsub.s32 0, %v44_v8  ;;  %v1224_v11 = vsub.s32 1, %v44_v8  ;;  %v961_v12 = vld [vmem:[%s1435_s1 + $0x2] sm:$0x3]  ;;  %v41_v13 = vld [vmem:[%s1435_s1] sm:$0x3] }
   0x5   :  { %vm68_vm0 = vcmp.lt.s32.totalorder %v1220_v9, 16  ;;  %vm38_vm1 = vcmp.lt.s32.totalorder %v1220_v9, 17  ;;  %v299_v30 = vld [vmem:[%s1435_s1] sm:$0x3]  ;;  %v979_v31 = vld [vmem:[%s1435_s1 + $0x2] sm:$0x3] }
   0x6   :  { %66 = vrot.lane.b32.xlu1 %v1168_v1, %s1089_s19  ;;  %34 = vrot.lane.b32.xlu0 %v1168_v1, %s1090_s20  ;;  %v77_v16 = vrot.slane %v961_v12, %v1222_v10  ;;  %v46_v17 = vrot.slane %v41_v13, %v1222_v10  ;;  %v50_v18 = vrot.slane %v41_v13, %v1224_v11  ;;  %v963_v48 = vld [vmem:[%s1435_s1 + $0x4] sm:$0x3]  ;;  %v965_v51 = vld [vmem:[%s1435_s1 + $0x6] sm:$0x3]  ;;  %vm99_vm2 = vcmp.lt.s32.totalorder %v1220_v9, 15 }
   0x7   :  { %v81_v19 = vrot.slane %v961_v12, %v1224_v11  ;;  %v304_v36 = vrot.slane %v299_v30, %v1222_v10  ;;  %v333_v37 = vrot.slane %v979_v31, %v1222_v10  ;;  %v308_v38 = vrot.slane %v299_v30, %v1224_v11 }
   0x8   :  { %v337_v39 = vrot.slane %v979_v31, %v1224_v11  ;;  %v108_v56 = vrot.slane %v963_v48, %v1222_v10  ;;  %v112_v57 = vrot.slane %v963_v48, %v1224_v11  ;;  %vm130_vm3 = vcmp.lt.s32.totalorder %v1220_v9, 1 }
   0x9   :  { %v139_v58 = vrot.slane %v965_v51, %v1222_v10  ;;  %v143_v59 = vrot.slane %v965_v51, %v1224_v11  ;;  %vm170_vm4 = vcmp.lt.s32.totalorder %v1220_v9, 127  ;;  %vm201_vm5 = vcmp.lt.s32.totalorder %v1220_v9, 113 }
   0xa   :  { %295 = vrot.lane.b32.xlu1 %v1175_v2, %s1090_s20  ;;  %293 = vrot.lane.b32.xlu0 %v1180_v3, %s1090_s20  ;;  %vm232_vm6 = vcmp.lt.s32.totalorder %v1220_v9, 112  ;;  %vm263_vm7 = vcmp.lt.s32.totalorder %v1220_v9, 111  ;;  %v1077_v9 = vpack.c.bf16 %v1175_v2, %v1175_v2 }
   0xe   :  { %324 = vrot.lane.b32.xlu1 %v1175_v2, %s1089_s19  ;;  %322 = vrot.lane.b32.xlu0 %v1180_v3, %s1089_s19 }
  0x12   :  { %97 = vrot.lane.b32.xlu1 %v1168_v1, %s1091_s27  ;;  %95 = vrot.lane.b32.xlu0 %v1161_v0, %s1091_s27 }
  0x16   :  { %128 = vrot.lane.b32.xlu1 %v1168_v1, %s1092_s28  ;;  %126 = vrot.lane.b32.xlu0 %v1161_v0, %s1092_s28 }
  0x1a   :  { %353 = vrot.lane.b32.xlu1 %v1175_v2, %s1091_s27  ;;  %351 = vrot.lane.b32.xlu0 %v1180_v3, %s1091_s27 }
  0x1e   :  { %382 = vrot.lane.b32.xlu1 %v1175_v2, %s1092_s28  ;;  %380 = vrot.lane.b32.xlu0 %v1180_v3, %s1092_s28 }
  0x22   :  { %168 = vrot.lane.b32.xlu1 %v1168_v1, %s1093_s0  ;;  %166 = vrot.lane.b32.xlu0 %v1161_v0, %s1093_s0 }
  0x26   :  { %420 = vrot.lane.b32.xlu1 %v1175_v2, %s1093_s0  ;;  %418 = vrot.lane.b32.xlu0 %v1180_v3, %s1093_s0 }
  0x2a   :  { %199 = vrot.lane.b32.xlu1 %v1168_v1, %s1094_s29  ;;  %197 = vrot.lane.b32.xlu0 %v1161_v0, %s1094_s29 }
  0x2e   :  { %230 = vrot.lane.b32.xlu1 %v1168_v1, %s1095_s30  ;;  %228 = vrot.lane.b32.xlu0 %v1161_v0, %s1095_s30 }
  0x32   :  { %449 = vrot.lane.b32.xlu1 %v1175_v2, %s1094_s29  ;;  %447 = vrot.lane.b32.xlu0 %v1180_v3, %s1094_s29 }
  0x36   :  { %478 = vrot.lane.b32.xlu1 %v1175_v2, %s1095_s30  ;;  %476 = vrot.lane.b32.xlu0 %v1180_v3, %s1095_s30 }
  0x3a   :  { %261 = vrot.lane.b32.xlu1 %v1168_v1, %s1097_s12  ;;  %259 = vrot.lane.b32.xlu0 %v1161_v0, %s1097_s12 }
  0x3e   :  { %507 = vrot.lane.b32.xlu1 %v1175_v2, %s1097_s12  ;;  %505 = vrot.lane.b32.xlu0 %v1180_v3, %s1097_s12 }
  0x42   :  { %556 = vperm.xlu0 %1087, %v553_v5   ;;  %790 = vperm.xlu1 %1088, %v787_v6  }
  0x74   :  { %v65_v14 = vpop.permute.xlu1 %64  ;;  %v33_v15 = vpop.permute.xlu0 %32 }
  0x78   :  { %v67_v20 = vpop.permute.xlu1 %66  ;;  %v35_v21 = vpop.permute.xlu0 %34 }
  0x79   :  { %v69_v22 = vsel %vm68_vm0, %v65_v14, %v67_v20  ;;  %v70_v23 = vsel %vm68_vm0, %v67_v20, %v65_v14  ;;  %v39_v24 = vsel %vm38_vm1, %v33_v15, %v35_v21  ;;  %v40_v25 = vsel %vm38_vm1, %v35_v21, %v33_v15  ;;  %v981_v14 = vld [vmem:[%s1435_s1 + $0x4] sm:$0x3]  ;;  %v983_v15 = vld [vmem:[%s1435_s1 + $0x6] sm:$0x3] }
  0x7a   :  { %v84_v26 = vmul.f32 %v77_v16, %v70_v23  ;;  %v53_v27 = vmul.f32 %v46_v17, %v40_v25  ;;  %v54_v28 = vmul.f32 %v50_v18, %v39_v24  ;;  %v85_v29 = vmul.f32 %v81_v19, %v69_v22  ;;  %v968_v24 = vld [vmem:[%s1435_s1 + $0xa] sm:$0x3] }
  0x7b   :  { %v362_v20 = vrot.slane %v981_v14, %v1222_v10  ;;  %v366_v21 = vrot.slane %v981_v14, %v1224_v11  ;;  %v391_v22 = vrot.slane %v983_v15, %v1222_v10  ;;  %v395_v23 = vrot.slane %v983_v15, %v1224_v11 }
  0x7c   :  { %v296_v32 = vpop.permute.xlu1 %295  ;;  %v294_v33 = vpop.permute.xlu0 %293  ;;  %v1055_v34 = vpack.c.bf16 %v85_v29, %v54_v28  ;;  %v1054_v35 = vpack.c.bf16 %v84_v26, %v53_v27  ;;  %v179_v31 = vrot.slane %v968_v24, %v1222_v10 }
  0x7d   :  { %v297_v40 = vsel %vm38_vm1, %v294_v33, %v296_v32  ;;  %v298_v41 = vsel %vm38_vm1, %v296_v32, %v294_v33  ;;  %v183_v32 = vrot.slane %v968_v24, %v1224_v11 }
  0x7e   :  { %666 = vmatprep.subr.bf16.mxu0 %v1055_v34  ;;  %v311_v46 = vmul.f32 %v304_v36, %v298_v41  ;;  %v312_v49 = vmul.f32 %v308_v38, %v297_v40 }
  0x7f   :  { %667 = vmatpush1.bf16.msra.mxu0 %v1054_v35 }
  0x80   :  { %v325_v42 = vpop.permute.xlu1 %324  ;;  %v323_v43 = vpop.permute.xlu0 %322 }
  0x81   :  { %v326_v44 = vsel %vm68_vm0, %v323_v43, %v325_v42  ;;  %v327_v45 = vsel %vm68_vm0, %v325_v42, %v323_v43 }
  0x82   :  { %v340_v47 = vmul.f32 %v333_v37, %v327_v45  ;;  %v341_v50 = vmul.f32 %v337_v39, %v326_v44  ;;  %v986_v37 = vld [vmem:[%s1435_s1 + $0xa] sm:$0x3] }
  0x84   :  { %v98_v52 = vpop.permute.xlu1 %97  ;;  %v96_v53 = vpop.permute.xlu0 %95  ;;  %v1057_v54 = vpack.c.bf16 %v341_v50, %v312_v49  ;;  %v1056_v55 = vpack.c.bf16 %v340_v47, %v311_v46  ;;  %v429_v46 = vrot.slane %v986_v37, %v1222_v10  ;;  %v433_v47 = vrot.slane %v986_v37, %v1224_v11 }
  0x85   :  { %v100_v60 = vsel %vm99_vm2, %v96_v53, %v98_v52  ;;  %v101_v61 = vsel %vm99_vm2, %v98_v52, %v96_v53 }
  0x86   :  { %707 = vmatprep.subr.bf16.mxu1 %v1057_v54  ;;  %v115_v7 = vmul.f32 %v108_v56, %v101_v61  ;;  %v116_v8 = vmul.f32 %v112_v57, %v100_v60  ;;  %v970_v56 = vld [vmem:[%s1435_s1 + $0xc] sm:$0x3]  ;;  %v972_v57 = vld [vmem:[%s1435_s1 + $0xe] sm:$0x3] }
  0x87   :  { %708 = vmatpush1.bf16.msra.mxu1 %v1056_v55 }
  0x88   :  { %v129_v62 = vpop.permute.xlu1 %128  ;;  %v127_v63 = vpop.permute.xlu0 %126 }
  0x89   :  { %v131_v5 = vsel %vm130_vm3, %v127_v63, %v129_v62  ;;  %v132_v6 = vsel %vm130_vm3, %v129_v62, %v127_v63  ;;  %v210_v62 = vrot.slane %v970_v56, %v1222_v10  ;;  %v214_v63 = vrot.slane %v970_v56, %v1224_v11 }
  0x8a   :  { %v146_v12 = vmul.f32 %v139_v58, %v132_v6  ;;  %v147_v13 = vmul.f32 %v143_v59, %v131_v5  ;;  %v241_v5 = vrot.slane %v972_v57, %v1222_v10  ;;  %v245_v6 = vrot.slane %v972_v57, %v1224_v11 }
  0x8c   :  { %v354_v16 = vpop.permute.xlu1 %353  ;;  %v352_v17 = vpop.permute.xlu0 %351  ;;  %v1059_v18 = vpack.c.bf16 %v147_v13, %v116_v8  ;;  %v1058_v19 = vpack.c.bf16 %v146_v12, %v115_v7 }
  0x8d   :  { %v355_v25 = vsel %vm99_vm2, %v352_v17, %v354_v16  ;;  %v356_v26 = vsel %vm99_vm2, %v354_v16, %v352_v17 }
  0x8e   :  { %668 = vmatprep.subr.bf16.mxu0 %v1059_v18  ;;  %v369_v33 = vmul.f32 %v362_v20, %v356_v26  ;;  %v370_v34 = vmul.f32 %v366_v21, %v355_v25  ;;  %v988_v20 = vld [vmem:[%s1435_s1 + $0xc] sm:$0x3]  ;;  %v990_v21 = vld [vmem:[%s1435_s1 + $0xe] sm:$0x3] }
  0x8f   :  { %669 = vmatpush1.bf16.msra.mxu0 %v1058_v19  ;;  %v458_v26 = vrot.slane %v988_v20, %v1222_v10 }
  0x90   :  { %v383_v27 = vpop.permute.xlu1 %382  ;;  %v381_v28 = vpop.permute.xlu0 %380 }
  0x91   :  { %v384_v29 = vsel %vm130_vm3, %v381_v28, %v383_v27  ;;  %v385_v30 = vsel %vm130_vm3, %v383_v27, %v381_v28  ;;  %v462_v27 = vrot.slane %v988_v20, %v1224_v11  ;;  %v487_v28 = vrot.slane %v990_v21, %v1222_v10 }
  0x92   :  { %v398_v35 = vmul.f32 %v391_v22, %v385_v30  ;;  %v399_v36 = vmul.f32 %v395_v23, %v384_v29  ;;  %v491_v29 = vrot.slane %v990_v21, %v1224_v11  ;;  %v974_v30 = vld [vmem:[%s1435_s1 + $0x10] sm:$0x3] }
  0x93   :  { %v272_v37 = vrot.slane %v974_v30, %v1222_v10 }
  0x94   :  { %v169_v38 = vpop.permute.xlu1 %168  ;;  %v167_v39 = vpop.permute.xlu0 %166  ;;  %v1061_v40 = vpack.c.bf16 %v399_v36, %v370_v34  ;;  %v1060_v41 = vpack.c.bf16 %v398_v35, %v369_v33 }
  0x95   :  { %v171_v42 = vsel %vm170_vm4, %v167_v39, %v169_v38  ;;  %v172_v43 = vsel %vm170_vm4, %v169_v38, %v167_v39  ;;  %v276_v38 = vrot.slane %v974_v30, %v1224_v11 }
  0x96   :  { %v186_v44 = vmul.f32 %v179_v31, %v171_v42  ;;  %v187_v45 = vmul.f32 %v183_v32, %v172_v43  ;;  %709 = vmatprep.subr.bf16.mxu1 %v1061_v40  ;;  %v992_v43 = vld [vmem:[%s1435_s1 + $0x10] sm:$0x3] }
  0x97   :  { %710 = vmatpush1.bf16.msra.mxu1 %v1060_v41 }
  0x98   :  { %v421_v48 = vpop.permute.xlu1 %420  ;;  %v419_v49 = vpop.permute.xlu0 %418  ;;  %v1063_v50 = vpack.c.bf16 %v187_v45, %v1168_v1  ;;  %v1062_v51 = vpack.c.bf16 %v186_v44, %v1161_v0 }
  0x99   :  { %v422_v52 = vsel %vm170_vm4, %v419_v49, %v421_v48  ;;  %v423_v53 = vsel %vm170_vm4, %v421_v48, %v419_v49 }
  0x9a   :  { %v436_v54 = vmul.f32 %v429_v46, %v422_v52  ;;  %v437_v55 = vmul.f32 %v433_v47, %v423_v53  ;;  %670 = vmatprep.subr.bf16.mxu0 %v1063_v50  ;;  %v516_v52 = vrot.slane %v992_v43, %v1222_v10  ;;  %v520_v53 = vrot.slane %v992_v43, %v1224_v11 }
  0x9b   :  { %671 = vmatpush1.bf16.msra.mxu0 %v1062_v51 }
  0x9c   :  { %v200_v58 = vpop.permute.xlu1 %199  ;;  %v198_v59 = vpop.permute.xlu0 %197  ;;  %v1065_v60 = vpack.c.bf16 %v437_v55, %v1175_v2  ;;  %v1064_v61 = vpack.c.bf16 %v436_v54, %v1180_v3  ;;  %v1074_v54 = vpack.c.bf16 %v1161_v0, %v1161_v0  ;;  %v534_v0 = vld [vmem:[%s1436_s2] sm:$0xf] }
  0x9d   :  { %v202_v7 = vsel %vm201_vm5, %v198_v59, %v200_v58  ;;  %v203_v8 = vsel %vm201_vm5, %v200_v58, %v198_v59  ;;  %v1075_v59 = vpack.c.bf16 %v1168_v1, %v1168_v1  ;;  %v786_v2 = vld [vmem:[%s1437_s4] sm:$0xf] }
  0x9e   :  { %711 = vmatprep.subr.bf16.mxu1 %v1065_v60  ;;  %v217_v16 = vmul.f32 %v210_v62, %v202_v7  ;;  %v218_v17 = vmul.f32 %v214_v63, %v203_v8  ;;  %v808_v1 = vsel %vm653_vm8, %v1074_v54, 0 }
  0x9f   :  { %712 = vmatpush1.bf16.msra.mxu1 %v1064_v61 }
  0xa0   :  { %v231_v12 = vpop.permute.xlu1 %230  ;;  %v229_v13 = vpop.permute.xlu0 %228 }
  0xa1   :  { %v233_v14 = vsel %vm232_vm6, %v229_v13, %v231_v12  ;;  %v234_v15 = vsel %vm232_vm6, %v231_v12, %v229_v13 }
  0xa2   :  { %v248_v18 = vmul.f32 %v241_v5, %v233_v14  ;;  %v249_v19 = vmul.f32 %v245_v6, %v234_v15  ;;  %v1076_v6 = vpack.c.bf16 %v1180_v3, %v1180_v3 }
  0xa4   :  { %v450_v22 = vpop.permute.xlu1 %449  ;;  %v448_v23 = vpop.permute.xlu0 %447  ;;  %v1067_v24 = vpack.c.bf16 %v249_v19, %v218_v17  ;;  %v1066_v25 = vpack.c.bf16 %v248_v18, %v217_v16  ;;  %v814_v8 = vsel %vm653_vm8, %v1076_v6, 0 }
  0xa5   :  { %v451_v31 = vsel %vm201_vm5, %v448_v23, %v450_v22  ;;  %v452_v32 = vsel %vm201_vm5, %v450_v22, %v448_v23 }
  0xa6   :  { %672 = vmatprep.subr.bf16.mxu0 %v1067_v24  ;;  %v465_v39 = vmul.f32 %v458_v26, %v451_v31  ;;  %v466_v40 = vmul.f32 %v462_v27, %v452_v32 }
  0xa7   :  { %673 = vmatpush1.bf16.msra.mxu0 %v1066_v25 }
  0xa8   :  { %v479_v33 = vpop.permute.xlu1 %478  ;;  %v477_v34 = vpop.permute.xlu0 %476 }
  0xa9   :  { %v480_v35 = vsel %vm232_vm6, %v477_v34, %v479_v33  ;;  %v481_v36 = vsel %vm232_vm6, %v479_v33, %v477_v34 }
  0xaa   :  { %v494_v41 = vmul.f32 %v487_v28, %v480_v35  ;;  %v495_v42 = vmul.f32 %v491_v29, %v481_v36 }
  0xac   :  { %v262_v44 = vpop.permute.xlu1 %261  ;;  %v260_v45 = vpop.permute.xlu0 %259  ;;  %v1069_v46 = vpack.c.bf16 %v495_v42, %v466_v40  ;;  %v1068_v47 = vpack.c.bf16 %v494_v41, %v465_v39 }
  0xad   :  { %v264_v48 = vsel %vm263_vm7, %v260_v45, %v262_v44  ;;  %v265_v49 = vsel %vm263_vm7, %v262_v44, %v260_v45 }
  0xae   :  { %v279_v50 = vmul.f32 %v272_v37, %v264_v48  ;;  %v280_v51 = vmul.f32 %v276_v38, %v265_v49  ;;  %713 = vmatprep.subr.bf16.mxu1 %v1069_v46 }
  0xaf   :  { %714 = vmatpush1.bf16.msra.mxu1 %v1068_v47 }
  0xb0   :  { %v1070_v55 = vpack.c.bf16 %v279_v50, %v279_v50  ;;  %v1071_v56 = vpack.c.bf16 %v280_v51, %v280_v51  ;;  %v508_v57 = vpop.permute.xlu1 %507  ;;  %v506_v58 = vpop.permute.xlu0 %505 }
  0xb1   :  { %v509_v60 = vsel %vm263_vm7, %v506_v58, %v508_v57  ;;  %v510_v10 = vsel %vm263_vm7, %v508_v57, %v506_v58 }
  0xb2   :  { %v523_v61 = vmul.f32 %v516_v52, %v509_v60  ;;  %v524_v11 = vmul.f32 %v520_v53, %v510_v10  ;;  %1014 = vmatprep.subr.msk.bf16.mxu0 %vm653_vm8, %v1071_v56  ;;  %v655_v62 = vsel %vm653_vm8, %v1070_v55, 0 }
  0xb3   :  { %675 = vmatpush1.bf16.msra.mxu0 %v655_v62 }
  0xb4   :  { %v1072_v63 = vpack.c.bf16 %v523_v61, %v523_v61  ;;  %v1073_v5 = vpack.c.bf16 %v524_v11, %v524_v11  ;;  %1025 = vmatprep.subr.msk.bf16.mxu0 %vm653_vm8, %v1075_v59 }
  0xb6   :  { %1015 = vmatmul.mubr.msk.bf16.vlgmr.msra.gmra.mrb[0].mxu0 %vm649_vm9, %v534_v0  ;;  %1016 = vmatprep.subr.msk.bf16.mxu1 %vm653_vm8, %v1073_v5  ;;  %v661_v7 = vsel %vm653_vm8, %v1072_v63, 0 }
  0xb7   :  { %716 = vmatpush1.bf16.msra.mxu1 %v661_v7  ;;  %820 = vmatpush1.bf16.msra.mxu0 %v808_v1 }
  0xb8   :  { %1027 = vmatprep.subr.msk.bf16.mxu1 %vm653_vm8, %v1077_v9  ;;  %851 = vmatprep.mubr.bf16.mxu0 %v1096_v4 }
  0xba   :  { %1017 = vmatmul.mubr.msk.bf16.vlgmr.msra.gmra.mrb[0].mxu1 %vm649_vm9, %v534_v0 }
  0xbb   :  { %861 = vmatpush1.bf16.msra.mxu1 %v814_v8  ;;  %892 = vmatprep.mubr.bf16.mxu1 %v1096_v4 }
  0xbe   :  { %1026 = vmatmul.mubr.msk.bf16.vlgmr.msra.gmra.mrb[4].mxu0 %vm803_vm10, %v786_v2 }
  0xc1   :  { %v557_v3 = vpop.permute.xlu0 %556  ;;  %v791_v26 = vpop.permute.xlu1 %790 }
  0xc2   :  { %1028 = vmatmul.mubr.msk.bf16.vlgmr.msra.gmra.mrb[4].mxu1 %vm803_vm10, %v786_v2 }
 0x189   :  { %v700_v12 = vpop.f32.mrb[0].mxu0 }
 0x18a   :  { %v702_v13 = vpop.f32.mrb[1].mxu0  ;;  %v701_v14 = vadd.f32 %v700_v12, %v557_v3 }
 0x18b   :  { %v704_v15 = vpop.f32.mrb[2].mxu0  ;;  %v703_v16 = vadd.f32 %v702_v13, %v557_v3 }
 0x18c   :  { %v705_v17 = vpop.f32.mrb[3].mxu0  ;;  %v774_v18 = vmul.f32 %v701_v14, %v701_v14 }
 0x18d   :  { %v1050_v19 = vpack.c.bf16 %v703_v16, %v701_v14  ;;  %v741_v20 = vpop.f32.mrb[0].mxu1  ;;  %v767_v21 = vadd.f32 %v703_v16, %v701_v14  ;;  %v775_v22 = vmul.f32 %v703_v16, %v703_v16 }
 0x18e   :  { %v742_v23 = vadd.f32 %v741_v20, %v557_v3  ;;  %v743_v24 = vpop.f32.mrb[1].mxu1 }
 0x18f   :  { %v744_v25 = vadd.f32 %v743_v24, %v557_v3  ;;  %756 = vst [vmem:[%s1438_s6] sm:$0xff] %v1050_v19  ;;  %v745_v4 = vpop.f32.mrb[2].mxu1  ;;  %v778_v27 = vadd.f32 %v775_v22, %v774_v18 }
 0x190   :  { %v776_v28 = vmul.f32 %v742_v23, %v742_v23  ;;  %v746_v29 = vpop.f32.mrb[3].mxu1  ;;  %v768_v30 = vadd.f32 %v767_v21, %v742_v23 }
 0x191   :  { %v1051_v31 = vpack.c.bf16 %v744_v25, %v742_v23  ;;  %v853_v32 = vpop.f32.mrb[4].mxu0  ;;  %v777_v33 = vmul.f32 %v744_v25, %v744_v25 }
 0x192   :  { %v855_v34 = vpop.f32.mrb[5].mxu0  ;;  %v854_v35 = vadd.f32 %v853_v32, %v791_v26  ;;  %v769_v36 = vadd.f32 %v768_v30, %v744_v25  ;;  %v779_v37 = vadd.f32 %v778_v27, %v776_v28 }
 0x193   :  { %1020 = vst [vmem:[%s1438_s6 + $0x8] sm:$0xff] %v1051_v31  ;;  %v856_v38 = vadd.f32 %v855_v34, %v791_v26  ;;  %v857_v39 = vpop.f32.mrb[6].mxu0 }
 0x194   :  { %770 = vadd.xlane.f32.xlu1 %v769_v36  ;;  %v858_v40 = vpop.f32.mrb[7].mxu0  ;;  %v780_v41 = vadd.f32 %v779_v37, %v777_v33  ;;  %v926_v42 = vmul.f32 %v854_v35, %v854_v35 }
 0x195   :  { %v1052_v43 = vpack.c.bf16 %v856_v38, %v854_v35  ;;  %v894_v44 = vpop.f32.mrb[4].mxu1  ;;  %v920_v45 = vadd.f32 %v856_v38, %v854_v35  ;;  %v927_v46 = vmul.f32 %v856_v38, %v856_v38 }
 0x196   :  { %v895_v47 = vadd.f32 %v894_v44, %v791_v26  ;;  %v896_v48 = vpop.f32.mrb[5].mxu1  ;;  %781 = vadd.xlane.f32.xlu0 %v780_v41 }
 0x197   :  { %v897_v49 = vadd.f32 %v896_v48, %v791_v26  ;;  %909 = vst [vmem:[%s1439_s9] sm:$0xff] %v1052_v43  ;;  %v898_v50 = vpop.f32.mrb[6].mxu1  ;;  %v930_v51 = vadd.f32 %v927_v46, %v926_v42 }
 0x198   :  { %v928_v52 = vmul.f32 %v895_v47, %v895_v47  ;;  %v899_v53 = vpop.f32.mrb[7].mxu1  ;;  %v921_v54 = vadd.f32 %v920_v45, %v895_v47 }
 0x199   :  { %v1053_v55 = vpack.c.bf16 %v897_v49, %v895_v47  ;;  %v929_v56 = vmul.f32 %v897_v49, %v897_v49 }
 0x19a   :  { %v922_v57 = vadd.f32 %v921_v54, %v897_v49  ;;  %v931_v58 = vadd.f32 %v930_v51, %v928_v52 }
 0x19b   :  { %1031 = vst [vmem:[%s1439_s9 + $0x8] sm:$0xff] %v1053_v55 }
 0x19c   :  { %923 = vadd.xlane.f32.xlu0 %v922_v57  ;;  %v932_v59 = vadd.f32 %v931_v58, %v929_v56 }
 0x19e   :  { %933 = vadd.xlane.f32.xlu1 %v932_v59 }
 0x221   :  { %v771_v60 = vpop.xlane.xlu1 %770 }
 0x222   :  { %773 = vst.msk [vmem:[%s1440_s7] sm:$0xff] %vm772_vm11, %v771_v60 }
 0x223   :  { %v782_v10 = vpop.xlane.xlu0 %781 }
 0x224   :  { %783 = vst.msk [vmem:[%s1441_s8] sm:$0xff] %vm772_vm11, %v782_v10 }
 0x229   :  { %v924_v61 = vpop.xlane.xlu0 %923 }
 0x22a   :  { %925 = vst.msk [vmem:[%s1442_s10] sm:$0xff] %vm772_vm11, %v924_v61 }
 0x22b   :  { %v934_v11 = vpop.xlane.xlu1 %933 }
 0x22c   :  { %935 = vst.msk [vmem:[%s1443_s11] sm:$0xff] %vm772_vm11, %v934_v11 }

</bundles_post_ra>
